<compile_context>
chip_gen: v7x
topology: tpu7x:2x2x1
jax: 0.10.0
libtpu: 0.0.40
codegen_flags: <defaults>
</compile_context>

<pallas_src>
import jax
import jax.numpy as jnp
from jax.experimental import pallas as pl
from jax.experimental.pallas import tpu as pltpu

HIDDEN = 256
NUM_PATCHES = 256
LANE = 128


def _mlp_kernel(x_ref, w1_ref, b1_ref, w2_ref, b2_ref, o_ref):
    # x_ref : (tile_m, Cp)   bf16  (Cp = C zero-padded to a multiple of 128)
    # w1_ref: (Cp, 256)      bf16
    # b1_ref: (1, 256)       f32
    # w2_ref: (256, 256)     bf16
    # b2_ref: (1, 256)       f32
    # o_ref : (tile_m, 256)  f32
    #
    # bf16 MXU matmuls with f32 accumulation; everything else in f32.
    h = jnp.dot(x_ref[...], w1_ref[...], preferred_element_type=jnp.float32)
    h = jnp.maximum(h + b1_ref[...], 0.0)                      # ReLU (f32)
    y = jnp.dot(h.astype(jnp.bfloat16), w2_ref[...],
                preferred_element_type=jnp.float32)
    y = y + b2_ref[...]
    # row-wise L2 norm: y / (sqrt(sum(y^2)) + 1e-7).
    # Reciprocal goes to the EUP (its own VLIW slot); the divide becomes a vmul.
    norm = jnp.sqrt(jnp.sum(y * y, axis=1, keepdims=True))
    inv = pl.reciprocal(norm + 1e-7, approx=True)
    o_ref[...] = (y * inv).astype(o_ref.dtype)


def _round_up(x, m):
    return ((x + m - 1) // m) * m


def _choose_tile_m(m):
    """256-row tiles to fill the v6e/v7x MXU when there is enough work (also
    keeps >= 2 grid steps at M > 256 so both v7x TensorCores get work); a
    single 128-row step for tiny inputs so padding stays bounded."""
    if m > 256:
        return 256
    return 128


@jax.jit
def mlp_head_pallas(x, w1, b1, w2, b2):
    """x: (M, C) f32 -> (M, 256) f32, fused MLP + L2 normalize."""
    M, C = x.shape
    tile_m = _choose_tile_m(M)
    M_pad = _round_up(M, tile_m)
    C_pad = _round_up(max(C, LANE), LANE)

    # Lane-dense, bf16 operands. Zero-padded C columns / w1 rows are exact.
    x_p = jnp.pad(x, ((0, M_pad - M), (0, C_pad - C))).astype(jnp.bfloat16)
    w1_p = jnp.pad(w1, ((0, C_pad - C), (0, 0))).astype(jnp.bfloat16)
    w2_p = w2.astype(jnp.bfloat16)

    grid = (M_pad // tile_m,)
    flops = 2 * M_pad * (C_pad * HIDDEN + HIDDEN * HIDDEN)
    bytes_accessed = (
        x_p.size * 2 + w1_p.size * 2 + w2_p.size * 2
        + b1.size * 4 + b2.size * 4 + M_pad * HIDDEN * 4
    )
    out = pl.pallas_call(
        _mlp_kernel,
        out_shape=jax.ShapeDtypeStruct((M_pad, HIDDEN), jnp.float32),
        grid_spec=pltpu.PrefetchScalarGridSpec(
            num_scalar_prefetch=0,
            grid=grid,
            in_specs=[
                pl.BlockSpec((tile_m, C_pad), lambda i: (i, 0)),
                pl.BlockSpec((C_pad, HIDDEN), lambda i: (0, 0)),
                pl.BlockSpec((1, HIDDEN), lambda i: (0, 0)),
                pl.BlockSpec((HIDDEN, HIDDEN), lambda i: (0, 0)),
                pl.BlockSpec((1, HIDDEN), lambda i: (0, 0)),
            ],
            out_specs=pl.BlockSpec((tile_m, HIDDEN), lambda i: (i, 0)),
        ),
        compiler_params=pltpu.CompilerParams(
            dimension_semantics=("parallel",)
        ),
        cost_estimate=pl.CostEstimate(
            flops=flops, transcendentals=2 * M_pad,
            bytes_accessed=bytes_accessed),
    )(x_p, w1_p, b1, w2_p, b2)
    return out[:M]


def init_mlp_params(key, feature_dimensions):
    """Deterministic init matching nn.Linear(in, 256) -> nn.Linear(256, 256)."""
    params = []
    for fd in feature_dimensions:
        key, k1, k2, k3, k4 = jax.random.split(key, 5)
        # PyTorch default Linear init: U(-1/sqrt(fan_in), 1/sqrt(fan_in))
        lim1 = 1.0 / jnp.sqrt(jnp.array(fd, jnp.float32))
        lim2 = 1.0 / jnp.sqrt(jnp.array(HIDDEN, jnp.float32))
        w1 = jax.random.uniform(k1, (fd, HIDDEN), jnp.float32, -lim1, lim1)
        b1 = jax.random.uniform(k2, (1, HIDDEN), jnp.float32, -lim1, lim1)
        w2 = jax.random.uniform(k3, (HIDDEN, HIDDEN), jnp.float32, -lim2, lim2)
        b2 = jax.random.uniform(k4, (1, HIDDEN), jnp.float32, -lim2, lim2)
        params.append((w1, b1, w2, b2))
    return params


def mlps_forward(features, params, sample_ids=None, *, key=None):
    """JAX equivalent of MLPs.forward.

    features: list of NCHW arrays.
    sample_ids: optional list of int index arrays (into H*W).
    Returns (return_features, return_ids).
    """
    # TODO(synk): fuse the patch gather into the pallas_call via
    # scalar-prefetched sample ids to avoid the extra HBM round trip; kept as
    # plain-JAX glue since the gathered tensors are tiny relative to the MLP.
    return_ids = []
    return_features = []
    if sample_ids is None and key is None:
        key = jax.random.PRNGKey(0)
    for i, feat in enumerate(features):
        N, C, H, W = feat.shape
        # NCHW -> NHWC -> (N, H*W, C)
        feat_reshape = jnp.transpose(feat, (0, 2, 3, 1)).reshape(N, H * W, C)
        if sample_ids is not None:
            sid = jnp.asarray(sample_ids[i], dtype=jnp.int32)
        else:
            key, sub = jax.random.split(key)
            perm = jax.random.permutation(sub, H * W)
            sid = perm[: min(NUM_PATCHES, H * W)].astype(jnp.int32)
        # gather sampled patches -> (N, S, C) -> (N*S, C)   (glue, not hot path)
        x_sample = feat_reshape[:, sid, :].reshape(N * sid.shape[0], C)
        w1, b1, w2, b2 = params[i]
        y = mlp_head_pallas(x_sample, w1, b1, w2, b2)
        return_ids.append(sid)
        return_features.append(y)
    return return_features, return_ids


def _reference_forward(features, params, sample_ids):
    """Pure-JAX f32 reference for correctness check."""
    outs = []
    for i, feat in enumerate(features):
        N, C, H, W = feat.shape
        fr = jnp.transpose(feat, (0, 2, 3, 1)).reshape(N, H * W, C)
        xs = fr[:, sample_ids[i], :].reshape(-1, C)
        w1, b1, w2, b2 = params[i]
        h = jnp.maximum(xs @ w1 + b1, 0.0)
        y = h @ w2 + b2
        norm = jnp.sqrt(jnp.sum(y * y, axis=1, keepdims=True))
        outs.append(y / (norm + 1e-7))
    return outs


if __name__ == "__main__":
    key = jax.random.PRNGKey(0)
    feature_dimensions = [4, 8]

    kx0, kx1, kp, ks = jax.random.split(key, 4)
    # Small NCHW feature maps, consistent with typical encoder outputs.
    features = [
        jax.random.normal(kx0, (2, 4, 16, 16), jnp.float32),   # H*W = 256
        jax.random.normal(kx1, (2, 8, 8, 8), jnp.float32),     # H*W = 64
    ]
    params = init_mlp_params(kp, feature_dimensions)

    # Deterministic sample ids (same role as np.random.permutation in torch code).
    ks0, ks1 = jax.random.split(ks)
    sample_ids = [
        jax.random.permutation(ks0, 16 * 16)[:NUM_PATCHES],
        jax.random.permutation(ks1, 8 * 8)[: min(NUM_PATCHES, 64)],
    ]

    out_feats, out_ids = mlps_forward(features, params, sample_ids=sample_ids)
    out_feats = [jax.block_until_ready(o) for o in out_feats]

    ref = _reference_forward(features, params, sample_ids)
    for a, b in zip(out_feats, ref):
        assert a.shape == b.shape
        # bf16 MXU operands with f32 accumulation + approx reciprocal: compare
        # against the f32 reference at a bf16-appropriate tolerance.
        assert jnp.max(jnp.abs(a - b)) < 1e-2

    print("KERNEL_OK")
</pallas_src>

<mosaic_0001>
module attributes {stable_mosaic.version = 11 : i64} {
  func.func @_mlp_kernel(%arg0: i32, %arg1: memref<256x128xbf16, #tpu.memory_space<vmem>>, %arg2: memref<128x256xbf16, #tpu.memory_space<vmem>>, %arg3: memref<1x256xf32, #tpu.memory_space<vmem>>, %arg4: memref<256x256xbf16, #tpu.memory_space<vmem>>, %arg5: memref<1x256xf32, #tpu.memory_space<vmem>>, %arg6: memref<256x256xf32, #tpu.memory_space<vmem>>) attributes {dimension_semantics = [#tpu.dimension_semantics<parallel>], iteration_bounds = array<i64: 2>, scalar_prefetch = 0 : i64, scratch_operands = 0 : i64, tpu.core_type = #tpu.core_type<tc>, window_params = [{transform_indices = @transform_0, window_bounds = array<i64: 256, 128>}, {pipeline_mode = #tpu.pipeline_mode<synchronous>, transform_indices = @transform_1, window_bounds = array<i64: 128, 256>}, {pipeline_mode = #tpu.pipeline_mode<synchronous>, transform_indices = @transform_2, window_bounds = array<i64: 1, 256>}, {pipeline_mode = #tpu.pipeline_mode<synchronous>, transform_indices = @transform_3, window_bounds = array<i64: 256, 256>}, {pipeline_mode = #tpu.pipeline_mode<synchronous>, transform_indices = @transform_4, window_bounds = array<i64: 1, 256>}, {transform_indices = @transform_5, window_bounds = array<i64: 256, 256>}]} {
    %c0 = arith.constant 0 : index
    %c0_0 = arith.constant 0 : index
    %0 = vector.load %arg1[%c0, %c0_0] : memref<256x128xbf16, #tpu.memory_space<vmem>>, vector<256x128xbf16>
    %c0_1 = arith.constant 0 : index
    %c0_2 = arith.constant 0 : index
    %1 = vector.load %arg2[%c0_1, %c0_2] : memref<128x256xbf16, #tpu.memory_space<vmem>>, vector<128x256xbf16>
    %cst = arith.constant dense<0.000000e+00> : vector<256x256xf32>
    %2 = tpu.matmul %0, %1, %cst {dimension_numbers = #tpu.dot_dimension_numbers<[1], [0], [0], [1], [0, 0, 1, 1], [], []>} : vector<256x128xbf16>, vector<128x256xbf16>, vector<256x256xf32> -> vector<256x256xf32>
    %c0_3 = arith.constant 0 : index
    %c0_4 = arith.constant 0 : index
    %3 = vector.load %arg3[%c0_3, %c0_4] : memref<1x256xf32, #tpu.memory_space<vmem>>, vector<1x256xf32>
    %4 = vector.broadcast %3 : vector<1x256xf32> to vector<256x256xf32>
    %5 = arith.addf %2, %4 : vector<256x256xf32>
    %cst_5 = arith.constant 0.000000e+00 : f32
    %6 = vector.broadcast %cst_5 : f32 to vector<256x256xf32>
    %7 = arith.maximumf %5, %6 : vector<256x256xf32>
    %8 = arith.truncf %7 : vector<256x256xf32> to vector<256x256xbf16>
    %c0_6 = arith.constant 0 : index
    %c0_7 = arith.constant 0 : index
    %9 = vector.load %arg4[%c0_6, %c0_7] : memref<256x256xbf16, #tpu.memory_space<vmem>>, vector<256x256xbf16>
    %cst_8 = arith.constant dense<0.000000e+00> : vector<256x256xf32>
    %10 = tpu.matmul %8, %9, %cst_8 {dimension_numbers = #tpu.dot_dimension_numbers<[1], [0], [0], [1], [0, 0, 1, 1], [], []>} : vector<256x256xbf16>, vector<256x256xbf16>, vector<256x256xf32> -> vector<256x256xf32>
    %c0_9 = arith.constant 0 : index
    %c0_10 = arith.constant 0 : index
    %11 = vector.load %arg5[%c0_9, %c0_10] : memref<1x256xf32, #tpu.memory_space<vmem>>, vector<1x256xf32>
    %12 = vector.broadcast %11 : vector<1x256xf32> to vector<256x256xf32>
    %13 = arith.addf %10, %12 : vector<256x256xf32>
    %14 = arith.mulf %13, %13 : vector<256x256xf32>
    %cst_11 = arith.constant dense<0.000000e+00> : vector<256xf32>
    %15 = vector.multi_reduction <add>, %14, %cst_11 [1] : vector<256x256xf32> to vector<256xf32>
    %16 = vector.shape_cast %15 : vector<256xf32> to vector<256x1xf32>
    %17 = math.sqrt %16 : vector<256x1xf32>
    %cst_12 = arith.constant 1.000000e-07 : f32
    %18 = vector.broadcast %cst_12 : f32 to vector<256x1xf32>
    %19 = arith.addf %17, %18 : vector<256x1xf32>
    %20 = tpu.reciprocal %19 {approx = true} : vector<256x1xf32> -> vector<256x1xf32>
    %21 = vector.broadcast %20 : vector<256x1xf32> to vector<256x256xf32>
    %22 = arith.mulf %13, %21 : vector<256x256xf32>
    %c0_13 = arith.constant 0 : index
    %c0_14 = arith.constant 0 : index
    %23 = vector.load %arg6[%c0_13, %c0_14] : memref<256x256xf32, #tpu.memory_space<vmem>>, vector<256x256xf32>
    tpu.vector_store %arg6[%c0_13, %c0_14], %22 {strides = array<i32>} : memref<256x256xf32, #tpu.memory_space<vmem>>, vector<256x256xf32>,
    return
  }
  func.func @transform_0(%arg0: i32) -> (i32, i32) {
    %c0_i32 = arith.constant 0 : i32
    %c0_i32_0 = arith.constant 0 : i32
    return %arg0, %c0_i32 : i32, i32
  }
  func.func @transform_1(%arg0: i32) -> (i32, i32) {
    %c0_i32 = arith.constant 0 : i32
    %c0_i32_0 = arith.constant 0 : i32
    %c0_i32_1 = arith.constant 0 : i32
    return %c0_i32, %c0_i32_0 : i32, i32
  }
  func.func @transform_2(%arg0: i32) -> (i32, i32) {
    %c0_i32 = arith.constant 0 : i32
    %c0_i32_0 = arith.constant 0 : i32
    %c0_i32_1 = arith.constant 0 : i32
    return %c0_i32, %c0_i32_0 : i32, i32
  }
  func.func @transform_3(%arg0: i32) -> (i32, i32) {
    %c0_i32 = arith.constant 0 : i32
    %c0_i32_0 = arith.constant 0 : i32
    %c0_i32_1 = arith.constant 0 : i32
    return %c0_i32, %c0_i32_0 : i32, i32
  }
  func.func @transform_4(%arg0: i32) -> (i32, i32) {
    %c0_i32 = arith.constant 0 : i32
    %c0_i32_0 = arith.constant 0 : i32
    %c0_i32_1 = arith.constant 0 : i32
    return %c0_i32, %c0_i32_0 : i32, i32
  }
  func.func @transform_5(%arg0: i32) -> (i32, i32) {
    %c0_i32 = arith.constant 0 : i32
    %c0_i32_0 = arith.constant 0 : i32
    return %arg0, %c0_i32 : i32, i32
  }
}

</mosaic_0001>

<bundles_post_ra>
// kernel: mlp_head_pallas.1
= control target key start
LH: loop header
LB: loop body
LE: loop exit
PB: predicated region body
PF: predicated region fallthrough
CT: control target
= control target key end

     0   :  { %10 = vsyncpa [#allocation3], 0  ;;  %s3134_s0 = inlined_call_operand.vmem [shape: bf16[512,128], index: 0, kind: input, shape index: {}]   ;;  %s3135_s1 = inlined_call_operand.vmem [shape: bf16[128,256], index: 1, kind: input, shape index: {}]   ;;  %s3136_s2 = inlined_call_operand.vmem [shape: f32[1,256], index: 2, kind: input, shape index: {}]   ;;  %s3137_s3 = inlined_call_operand.vmem [shape: bf16[256,256], index: 3, kind: input, shape index: {}]   ;;  %s3138_s4 = inlined_call_operand.vmem [shape: f32[1,256], index: 4, kind: input, shape index: {}]   ;;  %s3139_s5 = inlined_call_operand.hbm [shape: f32[512,256], index: 5, kind: output, shape index: {}]  }
   0x1   :  { %12 = vsyncpa [#allocation3 + $0x1], 0  ;;  %s2269_s18 = smov 0   ;;  %s2271_s19 = smov 0  }
   0x2   :  { %s2273_s20 = smov 0   ;;  %s2275_s21 = smov 0  }
   0x3 LB: > { %s2290_s22 = sadd.s32 4294967295, %s2233_s21   ;;  %s1802_s23 = sadd.s32 4294967294, %s2233_s21   ;;  %s2233_s21 = sphi %s2275_s21, %s3202_s21   ;;  %s2229_s20 = sphi %s2273_s20, %s3201_s20   ;;  %s2225_s19 = sphi %s2271_s19, %s3200_s19   ;;  %s2221_s18 = sphi %s2269_s18, %s3199_s18  }
   0x4   : > { %s2294_s24 = sadd.s32 1, %s2233_s21   ;;  %s135_s25 = sadd.s32 1, %s2229_s20 }
   0x5   : > { %s132_s26 = ssub.s32 %s2233_s21, %s2294_s24  ;;  %p145_p0 = scmp.ne.s32.totalorder %s2229_s20, %s2225_s19 }
   0x6   : > { %p133_p1 = scmp.eq.s32.totalorder %s132_s26, 0  ;;  %p146_p2 = scmp.eq.s32.totalorder %s2290_s22, 1 }
   0x7   : > { %p151_p3 = scmp.ne.s32.totalorder %s2225_s19, %s2221_s18  ;;  %p152_p4 = scmp.eq.s32.totalorder %s1802_s23, 1 }
   0x8   : > { %s2305_s27 = scalar_select %p133_p1, %s2229_s20, %s135_s25  }
   0x9   : > { %p2307_p5 = por %p146_p2, %p145_p0  ;;  %p2311_p6 = por %p152_p4, %p151_p3 }
   0xa   : > { %p1805_p7 = scmp.ge.s32.totalorder %s2233_s21, 1  ;;  %p191_p8 = scmp.lt.s32.totalorder %s2233_s21, 3 }
   0xc   : > { %p192_p9 = pnand %p1805_p7, %p191_p8 }
   0xe   : > { %195 = sbr.rel (%p192_p9) target bundleno = 804 (0x324), region = 40 }
  0x15   : > { %v1955_v0 = vld [vmem:[%s3135_s1 + $0x4] ss:$8 sps:$4 sm:$0xff]   ;;  %s1807_s7 = sshll.u32 %s2290_s22, 5  ;;  %v1957_v1 = vld [vmem:[%s3135_s1] ss:$8 sps:$4 sm:$0xff]   ;;  %v2235_v2 = vmov 0  }
  0x16   : > { %495 = vmatprep.mubr.bf16.mxu0 %v2235_v2  ;;  %p220_p10 = scmp.lt.s32.totalorder %s1807_s7, 63  ;;  %463 = vmatprep.subr.bf16.mxu0 %v1955_v0  ;;  %v1958_v3 = vld [vmem:[%s3135_s1 + $0x14] ss:$8 sps:$4 sm:$0xff]   ;;  %v1960_v4 = vld [vmem:[%s3135_s1 + $0x10] ss:$8 sps:$4 sm:$0xff]   ;;  %s216_s23 = sand.u32 1, %s2225_s19  }
  0x17   : > { %464 = vmatpush1.bf16.msra.mxu0 %v1957_v1  ;;  %v1961_v5 = vld [vmem:[%s3135_s1 + $0x24] ss:$8 sps:$4 sm:$0xff]   ;;  %v1963_v6 = vld [vmem:[%s3135_s1 + $0x20] ss:$8 sps:$4 sm:$0xff]   ;;  %v1964_v7 = vld [vmem:[%s3135_s1 + $0x34] ss:$8 sps:$4 sm:$0xff]   ;;  %v277_v1 = vlaneseq }
  0x18   : > { %s3204_s7 = smov (!%p220_p10, %s1807_s7), 63  ;;  %465 = vmatprep.subr.bf16.mxu0 %v1958_v3  ;;  %v1966_v8 = vld [vmem:[%s3135_s1 + $0x30] ss:$8 sps:$4 sm:$0xff]   ;;  %v1967_v9 = vld [vmem:[%s3135_s1 + $0x44] ss:$8 sps:$4 sm:$0xff]   ;;  %s1806_s25 = sshll.u32 %s216_s23, 9 }
  0x19   : > { %s1808_s16 = sshll.u32 %s3204_s7, 2  ;;  %v1969_v10 = vld [vmem:[%s3135_s1 + $0x40] ss:$8 sps:$4 sm:$0xff]   ;;  %v1970_v11 = vld [vmem:[%s3135_s1 + $0x54] ss:$8 sps:$4 sm:$0xff]   ;;  %v2499_v3 = vshrl.u32 %v277_v1, 7 }
  0x1a   : > { %s2343_s8 = scalar_lea.vmem %s3134_s0, %s1808_s16  ;;  %v1972_v12 = vld [vmem:[%s3135_s1 + $0x50] ss:$8 sps:$4 sm:$0xff]   ;;  %v1973_v13 = vld [vmem:[%s3135_s1 + $0x64] ss:$8 sps:$4 sm:$0xff]   ;;  %v1975_v14 = vld [vmem:[%s3135_s1 + $0x60] ss:$8 sps:$4 sm:$0xff]  }
  0x1b   : > { %466 = vmatpush1.bf16.msra.mxu0 %v1960_v4  ;;  %v1976_v15 = vld [vmem:[%s3135_s1 + $0x74] ss:$8 sps:$4 sm:$0xff]   ;;  %v1978_v16 = vld [vmem:[%s3135_s1 + $0x70] ss:$8 sps:$4 sm:$0xff]   ;;  %v1997_v17 = vld [vmem:[%s3137_s3 + $0x4] ss:$8 sps:$4 sm:$0xff]  }
  0x1c   : > { %467 = vmatprep.subr.bf16.mxu0 %v1961_v5  ;;  %v1995_v18 = vld [vmem:[%s3137_s3] ss:$8 sps:$4 sm:$0xff]   ;;  %v2000_v19 = vld [vmem:[%s3137_s3 + $0x14] ss:$8 sps:$4 sm:$0xff]   ;;  %1881 = vmatprep.subr.bf16.mxu1 %v1997_v17  ;;  %v1998_v21 = vld [vmem:[%s3137_s3 + $0x10] ss:$8 sps:$4 sm:$0xff]  }
  0x1d   : > { %v1979_v20 = vld [vmem:[%s2343_s8] sm:$0xff]   ;;  %1897 = vmatpush1.bf16.msra.mxu1 %v1995_v18  ;;  %v2006_v24 = vld [vmem:[%s3137_s3 + $0x34] ss:$8 sps:$4 sm:$0xff]   ;;  %v1980_v25 = vld [vmem:[%s2343_s8 + $0x8] sm:$0xff]   ;;  %v279_v4 = vsub.s32 0, %v2499_v3  ;;  %s2917_s26 = scalar_lea.vmem [#allocation2], %s1806_s25 }
  0x1e   : > { %1882 = vmatprep.subr.bf16.mxu1 %v2000_v19  ;;  %v2003_v22 = vld [vmem:[%s3137_s3 + $0x24] ss:$8 sps:$4 sm:$0xff]   ;;  %v2001_v23 = vld [vmem:[%s3137_s3 + $0x20] ss:$8 sps:$4 sm:$0xff]   ;;  %v2004_v26 = vld [vmem:[%s3137_s3 + $0x30] ss:$8 sps:$4 sm:$0xff]  }
  0x1f   : > { %468 = vmatpush1.bf16.msra.mxu0 %v1963_v6  ;;  %v2009_v27 = vld [vmem:[%s3137_s3 + $0x44] ss:$8 sps:$4 sm:$0xff]   ;;  %v2007_v28 = vld [vmem:[%s3137_s3 + $0x40] ss:$8 sps:$4 sm:$0xff]   ;;  %v1981_v29 = vld [vmem:[%s2343_s8 + $0x10] sm:$0xff]   ;;  %v283_v6 = vsub.s32 1, %v2499_v3 }
  0x20   : > { %469 = vmatprep.subr.bf16.mxu0 %v1964_v7  ;;  %v2012_v30 = vld [vmem:[%s3137_s3 + $0x54] ss:$8 sps:$4 sm:$0xff]   ;;  %v2010_v31 = vld [vmem:[%s3137_s3 + $0x50] ss:$8 sps:$4 sm:$0xff]   ;;  %v2015_v32 = vld [vmem:[%s3137_s3 + $0x64] ss:$8 sps:$4 sm:$0xff]  }
  0x21   : > { %1898 = vmatpush1.bf16.msra.mxu1 %v1998_v21  ;;  %v2013_v33 = vld [vmem:[%s3137_s3 + $0x60] ss:$8 sps:$4 sm:$0xff]   ;;  %v2018_v34 = vld [vmem:[%s3137_s3 + $0x74] ss:$8 sps:$4 sm:$0xff]   ;;  %v2016_v36 = vld [vmem:[%s3137_s3 + $0x70] ss:$8 sps:$4 sm:$0xff]  }
  0x22   : > { %1883 = vmatprep.subr.bf16.mxu1 %v2003_v22  ;;  %v1982_v35 = vld [vmem:[%s2343_s8 + $0x18] sm:$0xff]   ;;  %v2021_v37 = vld [vmem:[%s3137_s3 + $0x84] ss:$8 sps:$4 sm:$0xff]   ;;  %v2019_v38 = vld [vmem:[%s3137_s3 + $0x80] ss:$8 sps:$4 sm:$0xff]   ;;  %s1880_s30 = sshll.u32 %s2290_s22, 13 }
  0x23   : > { %470 = vmatpush1.bf16.msra.mxu0 %v1966_v8  ;;  %v2024_v39 = vld [vmem:[%s3137_s3 + $0x94] ss:$8 sps:$4 sm:$0xff]   ;;  %v1983_v40 = vld [vmem:[%s2343_s8 + $0x20] sm:$0xff]   ;;  %v2022_v41 = vld [vmem:[%s3137_s3 + $0x90] ss:$8 sps:$4 sm:$0xff]   ;;  %s1740_s6 = sshll.u32 %s2917_s26, 4  ;;  %s3081_s7 = scalar_lea.hbm %s3139_s5, %s1880_s30  ;;  %s3083_s6 = int_to_ptr.vmem [resolvable:$true] %s1740_s6 }
  0x24   : > { %471 = vmatprep.subr.bf16.mxu0 %v1967_v9  ;;  %v2027_v42 = vld [vmem:[%s3137_s3 + $0xa4] ss:$8 sps:$4 sm:$0xff]   ;;  %v2025_v43 = vld [vmem:[%s3137_s3 + $0xa0] ss:$8 sps:$4 sm:$0xff]   ;;  %v2030_v44 = vld [vmem:[%s3137_s3 + $0xb4] ss:$8 sps:$4 sm:$0xff]  }
  0x25   : > { %1899 = vmatpush1.bf16.msra.mxu1 %v2001_v23  ;;  %v1984_v45 = vld [vmem:[%s2343_s8 + $0x28] sm:$0xff]   ;;  %v2028_v46 = vld [vmem:[%s3137_s3 + $0xb0] ss:$8 sps:$4 sm:$0xff]   ;;  %v2036_v49 = vld [vmem:[%s3137_s3 + $0xd4] ss:$8 sps:$4 sm:$0xff]   ;;  %s3093_s22 = scalar_lea.sflag [#allocation3], %s216_s23 }
  0x26   : > { %1884 = vmatprep.subr.bf16.mxu1 %v2006_v24  ;;  %v2033_v47 = vld [vmem:[%s3137_s3 + $0xc4] ss:$8 sps:$4 sm:$0xff]   ;;  %v2031_v48 = vld [vmem:[%s3137_s3 + $0xc0] ss:$8 sps:$4 sm:$0xff]   ;;  %v1985_v50 = vld [vmem:[%s2343_s8 + $0x30] sm:$0xff]   ;;  %s2171_s11 = scalar_lea.vmem %s3083_s6, 8192 }
  0x27   : > { %472 = vmatpush1.bf16.msra.mxu0 %v1969_v10  ;;  %v2034_v51 = vld [vmem:[%s3137_s3 + $0xd0] ss:$8 sps:$4 sm:$0xff]   ;;  %v1987_v53 = vld [vmem:[%s2343_s8 + $0x40] sm:$0xff]   ;;  %v1988_v54 = vld [vmem:[%s2343_s8 + $0x48] sm:$0xff]   ;;  %p2172_p11 = scmp.ne.s32.totalorder %s3083_s6, %s2171_s11  ;;  %s2236_s12 = smov [#allocation2]  }
  0x28   : > { %473 = vmatprep.subr.bf16.mxu0 %v1970_v11  ;;  %v1986_v52 = vld [vmem:[%s2343_s8 + $0x38] sm:$0xff]   ;;  %v1989_v55 = vld [vmem:[%s2343_s8 + $0x50] sm:$0xff]   ;;  %v2039_v57 = vld [vmem:[%s3137_s3 + $0xe4] ss:$8 sps:$4 sm:$0xff]   ;;  %s2175_s13 = sshll.u32 %s2236_s12, 4  ;;  %s2176_s13 = int_to_ptr.vmem [resolvable:$false] %s2175_s13 }
  0x29   : > { %1900 = vmatpush1.bf16.msra.mxu1 %v2004_v26  ;;  %v1990_v56 = vld [vmem:[%s2343_s8 + $0x58] sm:$0xff]   ;;  %v2037_v58 = vld [vmem:[%s3137_s3 + $0xe0] ss:$8 sps:$4 sm:$0xff]   ;;  %v1993_v63 = vld [vmem:[%s2343_s8 + $0x70] sm:$0xff]   ;;  %p2173_p12 = pnand %p2172_p11, %p2307_p5  ;;  %s2177_s14 = scalar_lea.vmem %s2176_s13, 16384 }
  0x2a   : > { %1885 = vmatprep.subr.bf16.mxu1 %v2009_v27  ;;  %v2042_v59 = vld [vmem:[%s3137_s3 + $0xf4] ss:$8 sps:$4 sm:$0xff]   ;;  %v2040_v60 = vld [vmem:[%s3137_s3 + $0xf0] ss:$8 sps:$4 sm:$0xff]   ;;  %v1991_v61 = vld [vmem:[%s2343_s8 + $0x60] sm:$0xff]   ;;  %p2178_p0 = scmp.lt.s32.totalorder %s3083_s6, %s2176_s13  ;;  %p2179_p1 = scmp.lt.s32.totalorder %s2177_s14, %s2171_s11 }
  0x2b   : > { %474 = vmatpush1.bf16.msra.mxu0 %v1972_v12  ;;  %v1992_v62 = vld [vmem:[%s2343_s8 + $0x68] sm:$0xff]   ;;  %v1994_v0 = vld [vmem:[%s2343_s8 + $0x78] sm:$0xff]   ;;  %v275_v5 = vld [vmem:[%s3136_s2] sm:$0x3]  ;;  %p2174_p13 = pneg %p2173_p12 }
  0x2c   : > { %475 = vmatprep.subr.bf16.mxu0 %v1973_v13  ;;  %v2508_v7 = vrot.slane %v275_v5, %v279_v4  ;;  %p2180_p2 = por %p2179_p1, %p2178_p0 }
  0x2d   : > { %1901 = vmatpush1.bf16.msra.mxu1 %v2007_v28 }
  0x2e   : > { %1886 = vmatprep.subr.bf16.mxu1 %v2012_v30  ;;  %p2181_p3 = pnand %p2180_p2, %p2174_p13 }
  0x2f   : > { %476 = vmatpush1.bf16.msra.mxu0 %v1975_v14 }
  0x30   : > { %477 = vmatprep.subr.bf16.mxu0 %v1976_v15 }
  0x31   : > { %1902 = vmatpush1.bf16.msra.mxu1 %v2010_v31 }
  0x32   : > { %1887 = vmatprep.subr.bf16.mxu1 %v2015_v32 }
  0x33   : > { %478 = vmatpush1.bf16.msra.mxu0 %v1978_v16 }
  0x34   : > { %956 = vmatprep.subr.bf16.mxu0 %v1997_v17 }
  0x35   : > { %1903 = vmatpush1.bf16.msra.mxu1 %v2013_v33 }
  0x36   : > { %496 = vmatmul.mubr.bf16.vlgmr.msra.gmra.mrb[0].mxu0 %v1979_v20  ;;  %1888 = vmatprep.subr.bf16.mxu1 %v2018_v34 }
  0x37   : > { %505 = vmatprep.mubr.bf16.mxu0 %v2235_v2  ;;  %957 = vmatpush1.bf16.msra.mxu0 %v1995_v18 }
  0x38   : > { %958 = vmatprep.subr.bf16.mxu0 %v2000_v19 }
  0x39   : > { %1904 = vmatpush1.bf16.msra.mxu1 %v2016_v36 }
  0x3a   : > { %1889 = vmatprep.subr.bf16.mxu1 %v2021_v37 }
  0x3b   : > { %959 = vmatpush1.bf16.msra.mxu0 %v1998_v21 }
  0x3c   : > { %960 = vmatprep.subr.bf16.mxu0 %v2003_v22 }
  0x3d   : > { %1905 = vmatpush1.bf16.msra.mxu1 %v2019_v38 }
  0x3e   : > { %506 = vmatmul.mubr.bf16.gmra.mrb[4].mxu0 %v1980_v25  ;;  %1890 = vmatprep.subr.bf16.mxu1 %v2024_v39 }
  0x3f   : > { %515 = vmatprep.mubr.bf16.mxu0 %v2235_v2  ;;  %961 = vmatpush1.bf16.msra.mxu0 %v2001_v23 }
  0x40   : > { %962 = vmatprep.subr.bf16.mxu0 %v2006_v24 }
  0x41   : > { %1906 = vmatpush1.bf16.msra.mxu1 %v2022_v41 }
  0x42   : > { %1891 = vmatprep.subr.bf16.mxu1 %v2027_v42 }
  0x43   : > { %963 = vmatpush1.bf16.msra.mxu0 %v2004_v26 }
  0x44   : > { %964 = vmatprep.subr.bf16.mxu0 %v2009_v27 }
  0x45   : > { %1907 = vmatpush1.bf16.msra.mxu1 %v2025_v43 }
  0x46   : > { %516 = vmatmul.mubr.bf16.gmra.mrb[8].mxu0 %v1981_v29  ;;  %1892 = vmatprep.subr.bf16.mxu1 %v2030_v44 }
  0x47   : > { %525 = vmatprep.mubr.bf16.mxu0 %v2235_v2  ;;  %965 = vmatpush1.bf16.msra.mxu0 %v2007_v28 }
  0x48   : > { %966 = vmatprep.subr.bf16.mxu0 %v2012_v30 }
  0x49   : > { %1908 = vmatpush1.bf16.msra.mxu1 %v2028_v46 }
  0x4a   : > { %1893 = vmatprep.subr.bf16.mxu1 %v2033_v47 }
  0x4b   : > { %967 = vmatpush1.bf16.msra.mxu0 %v2010_v31 }
  0x4c   : > { %968 = vmatprep.subr.bf16.mxu0 %v2015_v32 }
  0x4d   : > { %1909 = vmatpush1.bf16.msra.mxu1 %v2031_v48 }
  0x4e   : > { %526 = vmatmul.mubr.bf16.gmra.mrb[12].mxu0 %v1982_v35  ;;  %1894 = vmatprep.subr.bf16.mxu1 %v2036_v49 }
  0x4f   : > { %535 = vmatprep.mubr.bf16.mxu0 %v2235_v2  ;;  %969 = vmatpush1.bf16.msra.mxu0 %v2013_v33 }
  0x50   : > { %970 = vmatprep.subr.bf16.mxu0 %v2018_v34 }
  0x51   : > { %1910 = vmatpush1.bf16.msra.mxu1 %v2034_v51 }
  0x52   : > { %1895 = vmatprep.subr.bf16.mxu1 %v2039_v57 }
  0x53   : > { %971 = vmatpush1.bf16.msra.mxu0 %v2016_v36 }
  0x54   : > { %972 = vmatprep.subr.bf16.mxu0 %v2021_v37 }
  0x55   : > { %1911 = vmatpush1.bf16.msra.mxu1 %v2037_v58 }
  0x56   : > { %536 = vmatmul.mubr.bf16.gmra.mrb[16].mxu0 %v1983_v40  ;;  %1896 = vmatprep.subr.bf16.mxu1 %v2042_v59 }
  0x57   : > { %545 = vmatprep.mubr.bf16.mxu0 %v2235_v2  ;;  %973 = vmatpush1.bf16.msra.mxu0 %v2019_v38 }
  0x58   : > { %974 = vmatprep.subr.bf16.mxu0 %v2024_v39 }
  0x59   : > { %1912 = vmatpush1.bf16.msra.mxu1 %v2040_v60 }
  0x5b   : > { %975 = vmatpush1.bf16.msra.mxu0 %v2022_v41 }
  0x5c   : > { %976 = vmatprep.subr.bf16.mxu0 %v2027_v42 }
  0x5e   : > { %546 = vmatmul.mubr.bf16.gmra.mrb[20].mxu0 %v1984_v45 }
  0x5f   : > { %555 = vmatprep.mubr.bf16.mxu0 %v2235_v2  ;;  %977 = vmatpush1.bf16.msra.mxu0 %v2025_v43 }
  0x60   : > { %978 = vmatprep.subr.bf16.mxu0 %v2030_v44 }
  0x63   : > { %979 = vmatpush1.bf16.msra.mxu0 %v2028_v46 }
  0x64   : > { %980 = vmatprep.subr.bf16.mxu0 %v2033_v47 }
  0x66   : > { %556 = vmatmul.mubr.bf16.gmra.mrb[24].mxu0 %v1985_v50 }
  0x67   : > { %565 = vmatprep.mubr.bf16.mxu0 %v2235_v2  ;;  %981 = vmatpush1.bf16.msra.mxu0 %v2031_v48 }
  0x68   : > { %982 = vmatprep.subr.bf16.mxu0 %v2036_v49 }
  0x6b   : > { %983 = vmatpush1.bf16.msra.mxu0 %v2034_v51 }
  0x6c   : > { %984 = vmatprep.subr.bf16.mxu0 %v2039_v57 }
  0x6e   : > { %566 = vmatmul.mubr.bf16.gmra.mrb[28].mxu0 %v1986_v52 }
  0x6f   : > { %575 = vmatprep.mubr.bf16.mxu0 %v2235_v2  ;;  %985 = vmatpush1.bf16.msra.mxu0 %v2037_v58 }
  0x70   : > { %986 = vmatprep.subr.bf16.mxu0 %v2042_v59 }
  0x73   : > { %987 = vmatpush1.bf16.msra.mxu0 %v2040_v60 }
  0x76   : > { %576 = vmatmul.mubr.bf16.gmra.mrb[32].mxu0 %v1987_v53 }
  0x77   : > { %585 = vmatprep.mubr.bf16.mxu0 %v2235_v2 }
  0x7e   : > { %586 = vmatmul.mubr.bf16.gmra.mrb[36].mxu0 %v1988_v54 }
  0x7f   : > { %595 = vmatprep.mubr.bf16.mxu0 %v2235_v2 }
  0x86   : > { %596 = vmatmul.mubr.bf16.gmra.mrb[40].mxu0 %v1989_v55 }
  0x87   : > { %605 = vmatprep.mubr.bf16.mxu0 %v2235_v2 }
  0x8e   : > { %606 = vmatmul.mubr.bf16.gmra.mrb[44].mxu0 %v1990_v56 }
  0x8f   : > { %615 = vmatprep.mubr.bf16.mxu0 %v2235_v2 }
  0x96   : > { %616 = vmatmul.mubr.bf16.gmra.mrb[48].mxu0 %v1991_v61 }
  0x97   : > { %625 = vmatprep.mubr.bf16.mxu0 %v2235_v2 }
  0x9e   : > { %626 = vmatmul.mubr.bf16.gmra.mrb[52].mxu0 %v1992_v62 }
  0x9f   : > { %635 = vmatprep.mubr.bf16.mxu0 %v2235_v2 }
  0xa6   : > { %636 = vmatmul.mubr.bf16.gmra.mrb[56].mxu0 %v1993_v63 }
  0xa7   : > { %645 = vmatprep.mubr.bf16.mxu0 %v2235_v2  ;;  %v2512_v2 = vrot.slane %v275_v5, %v283_v6 }
  0xae   : > { %646 = vmatmul.mubr.bf16.gmra.mrb[60].mxu0 %v1994_v0 }
 0x109   : > { %v497_v8 = vpop.f32.mrb[0].mxu0 }
 0x10a   : > { %v498_v9 = vadd.f32 %v497_v8, %v2508_v7  ;;  %v499_v10 = vpop.f32.mrb[1].mxu0 }
 0x10b   : > { %v500_v11 = vadd.f32 %v499_v10, %v2512_v2  ;;  %v501_v12 = vpop.f32.mrb[2].mxu0 }
 0x10c   : > { %v502_v13 = vadd.f32 %v501_v12, %v2508_v7  ;;  %v503_v14 = vpop.f32.mrb[3].mxu0  ;;  %v656_v16 = vmax.f32 %v498_v9, 0.0 }
 0x10d   : > { %v504_v15 = vadd.f32 %v503_v14, %v2512_v2  ;;  %v657_v18 = vmax.f32 %v500_v11, 0.0 }
 0x10e   : > { %v658_v17 = vmax.f32 %v502_v13, 0.0 }
 0x10f   : > { %v659_v19 = vmax.f32 %v504_v15, 0.0 }
 0x110   : > { %v720_v20 = vpack.c.bf16 %v658_v17, %v656_v16 }
 0x111   : > { %v721_v21 = vpack.c.bf16 %v659_v19, %v657_v18  ;;  %v507_v22 = vpop.f32.mrb[4].mxu0 }
 0x112   : > { %v508_v23 = vadd.f32 %v507_v22, %v2508_v7  ;;  %v509_v24 = vpop.f32.mrb[5].mxu0 }
 0x113   : > { %v510_v25 = vadd.f32 %v509_v24, %v2512_v2  ;;  %v511_v26 = vpop.f32.mrb[6].mxu0  ;;  %988 = vmatprep.mubr.bf16.mxu0 %v721_v21 }
 0x114   : > { %v512_v27 = vadd.f32 %v511_v26, %v2508_v7  ;;  %v513_v28 = vpop.f32.mrb[7].mxu0  ;;  %989 = vmatmul.mubr.bf16.vlgmr.msra.gmra.mrb[64].mxu0 %v720_v20  ;;  %v660_v30 = vmax.f32 %v508_v23, 0.0 }
 0x115   : > { %v514_v29 = vadd.f32 %v513_v28, %v2512_v2  ;;  %v661_v32 = vmax.f32 %v510_v25, 0.0 }
 0x116   : > { %v662_v31 = vmax.f32 %v512_v27, 0.0 }
 0x117   : > { %v663_v33 = vmax.f32 %v514_v29, 0.0 }
 0x118   : > { %v722_v34 = vpack.c.bf16 %v662_v31, %v660_v30 }
 0x119   : > { %v723_v35 = vpack.c.bf16 %v663_v33, %v661_v32  ;;  %v517_v36 = vpop.f32.mrb[8].mxu0 }
 0x11a   : > { %v518_v37 = vadd.f32 %v517_v36, %v2508_v7  ;;  %v519_v38 = vpop.f32.mrb[9].mxu0 }
 0x11b   : > { %v520_v39 = vadd.f32 %v519_v38, %v2512_v2  ;;  %v521_v40 = vpop.f32.mrb[10].mxu0  ;;  %998 = vmatprep.mubr.bf16.mxu0 %v723_v35 }
 0x11c   : > { %v522_v41 = vadd.f32 %v521_v40, %v2508_v7  ;;  %v523_v42 = vpop.f32.mrb[11].mxu0  ;;  %999 = vmatmul.mubr.bf16.gmra.mrb[68].mxu0 %v722_v34  ;;  %v664_v44 = vmax.f32 %v518_v37, 0.0 }
 0x11d   : > { %v524_v43 = vadd.f32 %v523_v42, %v2512_v2  ;;  %v665_v46 = vmax.f32 %v520_v39, 0.0 }
 0x11e   : > { %v666_v45 = vmax.f32 %v522_v41, 0.0 }
 0x11f   : > { %v667_v47 = vmax.f32 %v524_v43, 0.0 }
 0x120   : > { %v724_v48 = vpack.c.bf16 %v666_v45, %v664_v44 }
 0x121   : > { %v527_v49 = vpop.f32.mrb[12].mxu0  ;;  %v725_v50 = vpack.c.bf16 %v667_v47, %v665_v46 }
 0x122   : > { %v528_v51 = vadd.f32 %v527_v49, %v2508_v7  ;;  %v529_v52 = vpop.f32.mrb[13].mxu0 }
 0x123   : > { %v530_v53 = vadd.f32 %v529_v52, %v2512_v2  ;;  %v531_v54 = vpop.f32.mrb[14].mxu0  ;;  %1008 = vmatprep.mubr.bf16.mxu1 %v725_v50 }
 0x124   : > { %v532_v55 = vadd.f32 %v531_v54, %v2508_v7  ;;  %v533_v56 = vpop.f32.mrb[15].mxu0  ;;  %1009 = vmatmul.mubr.bf16.vlgmr.msra.gmra.mrb[0].mxu1 %v724_v48  ;;  %v668_v58 = vmax.f32 %v528_v51, 0.0 }
 0x125   : > { %v534_v57 = vadd.f32 %v533_v56, %v2512_v2  ;;  %v669_v60 = vmax.f32 %v530_v53, 0.0 }
 0x126   : > { %v670_v59 = vmax.f32 %v532_v55, 0.0 }
 0x127   : > { %v671_v61 = vmax.f32 %v534_v57, 0.0 }
 0x128   : > { %v726_v62 = vpack.c.bf16 %v670_v59, %v668_v58 }
 0x129   : > { %v727_v63 = vpack.c.bf16 %v671_v61, %v669_v60  ;;  %v537_v0 = vpop.f32.mrb[16].mxu0 }
 0x12a   : > { %v538_v1 = vadd.f32 %v537_v0, %v2508_v7  ;;  %v539_v5 = vpop.f32.mrb[17].mxu0 }
 0x12b   : > { %v540_v8 = vadd.f32 %v539_v5, %v2512_v2  ;;  %v541_v9 = vpop.f32.mrb[18].mxu0  ;;  %1018 = vmatprep.mubr.bf16.mxu1 %v727_v63 }
 0x12c   : > { %v542_v10 = vadd.f32 %v541_v9, %v2508_v7  ;;  %v543_v11 = vpop.f32.mrb[19].mxu0  ;;  %1019 = vmatmul.mubr.bf16.gmra.mrb[4].mxu1 %v726_v62  ;;  %v672_v13 = vmax.f32 %v538_v1, 0.0 }
 0x12d   : > { %v544_v12 = vadd.f32 %v543_v11, %v2512_v2  ;;  %v673_v15 = vmax.f32 %v540_v8, 0.0 }
 0x12e   : > { %v674_v14 = vmax.f32 %v542_v10, 0.0 }
 0x12f   : > { %v675_v16 = vmax.f32 %v544_v12, 0.0 }
 0x130   : > { %v728_v17 = vpack.c.bf16 %v674_v14, %v672_v13 }
 0x131   : > { %v729_v18 = vpack.c.bf16 %v675_v16, %v673_v15  ;;  %v547_v19 = vpop.f32.mrb[20].mxu0 }
 0x132   : > { %v548_v20 = vadd.f32 %v547_v19, %v2508_v7  ;;  %v549_v21 = vpop.f32.mrb[21].mxu0 }
 0x133   : > { %v550_v22 = vadd.f32 %v549_v21, %v2512_v2  ;;  %v551_v23 = vpop.f32.mrb[22].mxu0  ;;  %1028 = vmatprep.mubr.bf16.mxu1 %v729_v18 }
 0x134   : > { %v552_v24 = vadd.f32 %v551_v23, %v2508_v7  ;;  %v553_v25 = vpop.f32.mrb[23].mxu0  ;;  %1029 = vmatmul.mubr.bf16.gmra.mrb[8].mxu1 %v728_v17  ;;  %v676_v27 = vmax.f32 %v548_v20, 0.0 }
 0x135   : > { %v554_v26 = vadd.f32 %v553_v25, %v2512_v2  ;;  %v677_v29 = vmax.f32 %v550_v22, 0.0 }
 0x136   : > { %v678_v28 = vmax.f32 %v552_v24, 0.0 }
 0x137   : > { %v679_v30 = vmax.f32 %v554_v26, 0.0 }
 0x138   : > { %v730_v31 = vpack.c.bf16 %v678_v28, %v676_v27 }
 0x139   : > { %v731_v32 = vpack.c.bf16 %v679_v30, %v677_v29  ;;  %v557_v33 = vpop.f32.mrb[24].mxu0 }
 0x13a   : > { %v558_v34 = vadd.f32 %v557_v33, %v2508_v7  ;;  %v559_v35 = vpop.f32.mrb[25].mxu0 }
 0x13b   : > { %v560_v36 = vadd.f32 %v559_v35, %v2512_v2  ;;  %v561_v37 = vpop.f32.mrb[26].mxu0  ;;  %1038 = vmatprep.mubr.bf16.mxu1 %v731_v32 }
 0x13c   : > { %v562_v38 = vadd.f32 %v561_v37, %v2508_v7  ;;  %v563_v39 = vpop.f32.mrb[27].mxu0  ;;  %1039 = vmatmul.mubr.bf16.gmra.mrb[12].mxu1 %v730_v31  ;;  %v680_v41 = vmax.f32 %v558_v34, 0.0 }
 0x13d   : > { %v564_v40 = vadd.f32 %v563_v39, %v2512_v2  ;;  %v681_v43 = vmax.f32 %v560_v36, 0.0 }
 0x13e   : > { %v682_v42 = vmax.f32 %v562_v38, 0.0 }
 0x13f   : > { %v683_v44 = vmax.f32 %v564_v40, 0.0 }
 0x140   : > { %v732_v45 = vpack.c.bf16 %v682_v42, %v680_v41 }
 0x141   : > { %v733_v46 = vpack.c.bf16 %v683_v44, %v681_v43  ;;  %v567_v47 = vpop.f32.mrb[28].mxu0 }
 0x142   : > { %v568_v48 = vadd.f32 %v567_v47, %v2508_v7  ;;  %v569_v49 = vpop.f32.mrb[29].mxu0 }
 0x143   : > { %v570_v50 = vadd.f32 %v569_v49, %v2512_v2  ;;  %v571_v51 = vpop.f32.mrb[30].mxu0  ;;  %1048 = vmatprep.mubr.bf16.mxu1 %v733_v46 }
 0x144   : > { %v572_v52 = vadd.f32 %v571_v51, %v2508_v7  ;;  %v573_v53 = vpop.f32.mrb[31].mxu0  ;;  %1049 = vmatmul.mubr.bf16.gmra.mrb[16].mxu1 %v732_v45  ;;  %v684_v55 = vmax.f32 %v568_v48, 0.0 }
 0x145   : > { %v574_v54 = vadd.f32 %v573_v53, %v2512_v2  ;;  %v685_v57 = vmax.f32 %v570_v50, 0.0 }
 0x146   : > { %v686_v56 = vmax.f32 %v572_v52, 0.0 }
 0x147   : > { %v687_v58 = vmax.f32 %v574_v54, 0.0 }
 0x148   : > { %v734_v59 = vpack.c.bf16 %v686_v56, %v684_v55 }
 0x149   : > { %v735_v60 = vpack.c.bf16 %v687_v58, %v685_v57  ;;  %v577_v61 = vpop.f32.mrb[32].mxu0 }
 0x14a   : > { %v578_v62 = vadd.f32 %v577_v61, %v2508_v7  ;;  %v579_v63 = vpop.f32.mrb[33].mxu0 }
 0x14b   : > { %v580_v0 = vadd.f32 %v579_v63, %v2512_v2  ;;  %v581_v1 = vpop.f32.mrb[34].mxu0  ;;  %1058 = vmatprep.mubr.bf16.mxu1 %v735_v60 }
 0x14c   : > { %v582_v5 = vadd.f32 %v581_v1, %v2508_v7  ;;  %v583_v8 = vpop.f32.mrb[35].mxu0  ;;  %1059 = vmatmul.mubr.bf16.gmra.mrb[20].mxu1 %v734_v59  ;;  %v688_v10 = vmax.f32 %v578_v62, 0.0 }
 0x14d   : > { %v584_v9 = vadd.f32 %v583_v8, %v2512_v2  ;;  %v689_v12 = vmax.f32 %v580_v0, 0.0 }
 0x14e   : > { %v690_v11 = vmax.f32 %v582_v5, 0.0 }
 0x14f   : > { %v691_v13 = vmax.f32 %v584_v9, 0.0 }
 0x150   : > { %v736_v14 = vpack.c.bf16 %v690_v11, %v688_v10 }
 0x151   : > { %v737_v15 = vpack.c.bf16 %v691_v13, %v689_v12  ;;  %v587_v16 = vpop.f32.mrb[36].mxu0 }
 0x152   : > { %v588_v17 = vadd.f32 %v587_v16, %v2508_v7  ;;  %v589_v18 = vpop.f32.mrb[37].mxu0 }
 0x153   : > { %v590_v19 = vadd.f32 %v589_v18, %v2512_v2  ;;  %v591_v20 = vpop.f32.mrb[38].mxu0  ;;  %1068 = vmatprep.mubr.bf16.mxu1 %v737_v15 }
 0x154   : > { %v592_v21 = vadd.f32 %v591_v20, %v2508_v7  ;;  %v593_v22 = vpop.f32.mrb[39].mxu0  ;;  %1069 = vmatmul.mubr.bf16.gmra.mrb[24].mxu1 %v736_v14  ;;  %v692_v24 = vmax.f32 %v588_v17, 0.0 }
 0x155   : > { %v594_v23 = vadd.f32 %v593_v22, %v2512_v2  ;;  %v693_v26 = vmax.f32 %v590_v19, 0.0 }
 0x156   : > { %v694_v25 = vmax.f32 %v592_v21, 0.0 }
 0x157   : > { %v695_v27 = vmax.f32 %v594_v23, 0.0 }
 0x158   : > { %v738_v28 = vpack.c.bf16 %v694_v25, %v692_v24 }
 0x159   : > { %v739_v29 = vpack.c.bf16 %v695_v27, %v693_v26  ;;  %v597_v30 = vpop.f32.mrb[40].mxu0 }
 0x15a   : > { %v598_v31 = vadd.f32 %v597_v30, %v2508_v7  ;;  %v599_v32 = vpop.f32.mrb[41].mxu0 }
 0x15b   : > { %v600_v33 = vadd.f32 %v599_v32, %v2512_v2  ;;  %v601_v34 = vpop.f32.mrb[42].mxu0  ;;  %1078 = vmatprep.mubr.bf16.mxu1 %v739_v29 }
 0x15c   : > { %v602_v35 = vadd.f32 %v601_v34, %v2508_v7  ;;  %v603_v36 = vpop.f32.mrb[43].mxu0  ;;  %1079 = vmatmul.mubr.bf16.gmra.mrb[28].mxu1 %v738_v28  ;;  %v696_v38 = vmax.f32 %v598_v31, 0.0 }
 0x15d   : > { %v604_v37 = vadd.f32 %v603_v36, %v2512_v2  ;;  %v697_v40 = vmax.f32 %v600_v33, 0.0 }
 0x15e   : > { %v698_v39 = vmax.f32 %v602_v35, 0.0 }
 0x15f   : > { %v699_v41 = vmax.f32 %v604_v37, 0.0 }
 0x160   : > { %v740_v42 = vpack.c.bf16 %v698_v39, %v696_v38 }
 0x161   : > { %v741_v43 = vpack.c.bf16 %v699_v41, %v697_v40  ;;  %v607_v44 = vpop.f32.mrb[44].mxu0 }
 0x162   : > { %v608_v45 = vadd.f32 %v607_v44, %v2508_v7  ;;  %v609_v46 = vpop.f32.mrb[45].mxu0 }
 0x163   : > { %v610_v47 = vadd.f32 %v609_v46, %v2512_v2  ;;  %v611_v48 = vpop.f32.mrb[46].mxu0  ;;  %1088 = vmatprep.mubr.bf16.mxu1 %v741_v43 }
 0x164   : > { %v612_v49 = vadd.f32 %v611_v48, %v2508_v7  ;;  %v613_v50 = vpop.f32.mrb[47].mxu0  ;;  %1089 = vmatmul.mubr.bf16.gmra.mrb[32].mxu1 %v740_v42  ;;  %v700_v52 = vmax.f32 %v608_v45, 0.0 }
 0x165   : > { %v614_v51 = vadd.f32 %v613_v50, %v2512_v2  ;;  %v701_v54 = vmax.f32 %v610_v47, 0.0 }
 0x166   : > { %v702_v53 = vmax.f32 %v612_v49, 0.0 }
 0x167   : > { %v703_v55 = vmax.f32 %v614_v51, 0.0 }
 0x168   : > { %v742_v56 = vpack.c.bf16 %v702_v53, %v700_v52 }
 0x169   : > { %v743_v57 = vpack.c.bf16 %v703_v55, %v701_v54  ;;  %v617_v58 = vpop.f32.mrb[48].mxu0  ;;  %v784_v55 = vld [vmem:[%s3138_s4] sm:$0x3] }
 0x16a   : > { %v618_v59 = vadd.f32 %v617_v58, %v2508_v7  ;;  %v619_v60 = vpop.f32.mrb[49].mxu0 }
 0x16b   : > { %v620_v61 = vadd.f32 %v619_v60, %v2512_v2  ;;  %v621_v62 = vpop.f32.mrb[50].mxu0  ;;  %1098 = vmatprep.mubr.bf16.mxu1 %v743_v57 }
 0x16c   : > { %v622_v63 = vadd.f32 %v621_v62, %v2508_v7  ;;  %v623_v0 = vpop.f32.mrb[51].mxu0  ;;  %1099 = vmatmul.mubr.bf16.gmra.mrb[36].mxu1 %v742_v56  ;;  %v704_v5 = vmax.f32 %v618_v59, 0.0  ;;  %v2583_v56 = vrot.slane %v784_v55, %v279_v4 }
 0x16d   : > { %v624_v1 = vadd.f32 %v623_v0, %v2512_v2  ;;  %v705_v9 = vmax.f32 %v620_v61, 0.0 }
 0x16e   : > { %v706_v8 = vmax.f32 %v622_v63, 0.0 }
 0x16f   : > { %v707_v10 = vmax.f32 %v624_v1, 0.0 }
 0x170   : > { %v744_v11 = vpack.c.bf16 %v706_v8, %v704_v5 }
 0x171   : > { %v745_v12 = vpack.c.bf16 %v707_v10, %v705_v9  ;;  %v627_v13 = vpop.f32.mrb[52].mxu0 }
 0x172   : > { %v628_v14 = vadd.f32 %v627_v13, %v2508_v7  ;;  %v629_v15 = vpop.f32.mrb[53].mxu0 }
 0x173   : > { %v630_v16 = vadd.f32 %v629_v15, %v2512_v2  ;;  %v631_v17 = vpop.f32.mrb[54].mxu0  ;;  %1108 = vmatprep.mubr.bf16.mxu1 %v745_v12 }
 0x174   : > { %v632_v18 = vadd.f32 %v631_v17, %v2508_v7  ;;  %v633_v19 = vpop.f32.mrb[55].mxu0  ;;  %1109 = vmatmul.mubr.bf16.gmra.mrb[40].mxu1 %v744_v11  ;;  %v708_v21 = vmax.f32 %v628_v14, 0.0 }
 0x175   : > { %v634_v20 = vadd.f32 %v633_v19, %v2512_v2  ;;  %v709_v23 = vmax.f32 %v630_v16, 0.0 }
 0x176   : > { %v710_v22 = vmax.f32 %v632_v18, 0.0 }
 0x177   : > { %v711_v24 = vmax.f32 %v634_v20, 0.0 }
 0x178   : > { %v746_v25 = vpack.c.bf16 %v710_v22, %v708_v21 }
 0x179   : > { %v747_v26 = vpack.c.bf16 %v711_v24, %v709_v23  ;;  %v637_v27 = vpop.f32.mrb[56].mxu0 }
 0x17a   : > { %v638_v28 = vadd.f32 %v637_v27, %v2508_v7  ;;  %v639_v29 = vpop.f32.mrb[57].mxu0 }
 0x17b   : > { %v640_v30 = vadd.f32 %v639_v29, %v2512_v2  ;;  %v641_v31 = vpop.f32.mrb[58].mxu0  ;;  %1118 = vmatprep.mubr.bf16.mxu1 %v747_v26 }
 0x17c   : > { %v642_v32 = vadd.f32 %v641_v31, %v2508_v7  ;;  %v643_v33 = vpop.f32.mrb[59].mxu0  ;;  %1119 = vmatmul.mubr.bf16.gmra.mrb[44].mxu1 %v746_v25  ;;  %v712_v35 = vmax.f32 %v638_v28, 0.0 }
 0x17d   : > { %v644_v34 = vadd.f32 %v643_v33, %v2512_v2  ;;  %v713_v37 = vmax.f32 %v640_v30, 0.0 }
 0x17e   : > { %v714_v36 = vmax.f32 %v642_v32, 0.0 }
 0x17f   : > { %v715_v38 = vmax.f32 %v644_v34, 0.0 }
 0x180   : > { %v748_v39 = vpack.c.bf16 %v714_v36, %v712_v35 }
 0x181   : > { %v749_v40 = vpack.c.bf16 %v715_v38, %v713_v37  ;;  %v647_v41 = vpop.f32.mrb[60].mxu0 }
 0x182   : > { %v648_v42 = vadd.f32 %v647_v41, %v2508_v7  ;;  %v649_v43 = vpop.f32.mrb[61].mxu0 }
 0x183   : > { %v650_v44 = vadd.f32 %v649_v43, %v2512_v2  ;;  %v651_v45 = vpop.f32.mrb[62].mxu0  ;;  %1128 = vmatprep.mubr.bf16.mxu1 %v749_v40 }
 0x184   : > { %v652_v46 = vadd.f32 %v651_v45, %v2508_v7  ;;  %v653_v47 = vpop.f32.mrb[63].mxu0  ;;  %1129 = vmatmul.mubr.bf16.gmra.mrb[48].mxu1 %v748_v39  ;;  %v716_v49 = vmax.f32 %v648_v42, 0.0  ;;  %v2587_v7 = vrot.slane %v784_v55, %v283_v6 }
 0x185   : > { %v654_v48 = vadd.f32 %v653_v47, %v2512_v2  ;;  %v717_v51 = vmax.f32 %v650_v44, 0.0 }
 0x186   : > { %v718_v50 = vmax.f32 %v652_v46, 0.0 }
 0x187   : > { %v719_v52 = vmax.f32 %v654_v48, 0.0 }
 0x188   : > { %v750_v53 = vpack.c.bf16 %v718_v50, %v716_v49 }
 0x189   : > { %v751_v54 = vpack.c.bf16 %v719_v52, %v717_v51 }
 0x18b   : > { %1138 = vmatprep.mubr.bf16.mxu1 %v751_v54 }
 0x18c   : > { %1139 = vmatmul.mubr.bf16.gmra.mrb[52].mxu1 %v750_v53 }
 0x1e7   : > { %v990_v2 = vpop.f32.mrb[64].mxu0 }
 0x1e8   : > { %v2590_v57 = vadd.f32 %v990_v2, %v2583_v56  ;;  %v992_v58 = vpop.f32.mrb[65].mxu0 }
 0x1e9   : > { %v2593_v59 = vadd.f32 %v992_v58, %v2587_v7  ;;  %v994_v60 = vpop.f32.mrb[66].mxu0 }
 0x1ea   : > { %v2596_v61 = vadd.f32 %v994_v60, %v2583_v56  ;;  %v996_v62 = vpop.f32.mrb[67].mxu0  ;;  %v1149_v4 = vmul.f32 %v2590_v57, %v2590_v57 }
 0x1eb   : > { %v2601_v3 = vadd.f32 %v996_v62, %v2587_v7  ;;  %v1150_v6 = vmul.f32 %v2593_v59, %v2593_v59 }
 0x1ec   : > { %v1151_v63 = vmul.f32 %v2596_v61, %v2596_v61 }
 0x1ed   : > { %v1152_v0 = vmul.f32 %v2601_v3, %v2601_v3  ;;  %v1213_v1 = vadd.f32 %v1150_v6, %v1149_v4 }
 0x1ef   : > { %v1000_v5 = vpop.f32.mrb[68].mxu0  ;;  %1214 = vadd.xlane.f32.xlu0 %v1213_v1  ;;  %v1216_v12 = vadd.f32 %v1152_v0, %v1151_v63 }
 0x1f0   : > { %v2610_v8 = vadd.f32 %v1000_v5, %v2583_v56  ;;  %v1002_v9 = vpop.f32.mrb[69].mxu0 }
 0x1f1   : > { %v2613_v10 = vadd.f32 %v1002_v9, %v2587_v7  ;;  %v1004_v11 = vpop.f32.mrb[70].mxu0 }
 0x1f2   : > { %v2616_v13 = vadd.f32 %v1004_v11, %v2583_v56  ;;  %v1006_v14 = vpop.f32.mrb[71].mxu0  ;;  %v1153_v15 = vmul.f32 %v2610_v8, %v2610_v8 }
 0x1f3   : > { %v2621_v16 = vadd.f32 %v1006_v14, %v2587_v7  ;;  %1217 = vadd.xlane.f32.xlu0 %v1216_v12  ;;  %v1154_v17 = vmul.f32 %v2613_v10, %v2613_v10 }
 0x1f4   : > { %v1155_v18 = vmul.f32 %v2616_v13, %v2616_v13 }
 0x1f5   : > { %v1156_v19 = vmul.f32 %v2621_v16, %v2621_v16  ;;  %v1219_v20 = vadd.f32 %v1154_v17, %v1153_v15 }
 0x1f7   : > { %v1010_v21 = vpop.f32.mrb[0].mxu1  ;;  %1220 = vadd.xlane.f32.xlu1 %v1219_v20  ;;  %v1222_v26 = vadd.f32 %v1156_v19, %v1155_v18 }
 0x1f8   : > { %v2630_v22 = vadd.f32 %v1010_v21, %v2583_v56  ;;  %v1012_v23 = vpop.f32.mrb[1].mxu1 }
 0x1f9   : > { %v2633_v24 = vadd.f32 %v1012_v23, %v2587_v7  ;;  %v1014_v25 = vpop.f32.mrb[2].mxu1 }
 0x1fa   : > { %v1157_v27 = vmul.f32 %v2630_v22, %v2630_v22  ;;  %v2638_v28 = vadd.f32 %v1014_v25, %v2583_v56  ;;  %v1016_v29 = vpop.f32.mrb[3].mxu1 }
 0x1fb   : > { %v1158_v30 = vmul.f32 %v2633_v24, %v2633_v24  ;;  %v2643_v31 = vadd.f32 %v1016_v29, %v2587_v7  ;;  %1223 = vadd.xlane.f32.xlu1 %v1222_v26 }
 0x1fc   : > { %v1159_v32 = vmul.f32 %v2638_v28, %v2638_v28 }
 0x1fd   : > { %v1160_v33 = vmul.f32 %v2643_v31, %v2643_v31  ;;  %v1225_v34 = vadd.f32 %v1158_v30, %v1157_v27 }
 0x1ff   : > { %v1020_v35 = vpop.f32.mrb[4].mxu1  ;;  %1226 = vadd.xlane.f32.xlu0 %v1225_v34  ;;  %v1228_v36 = vadd.f32 %v1160_v33, %v1159_v32 }
 0x200   : > { %v2650_v37 = vadd.f32 %v1020_v35, %v2583_v56  ;;  %v1022_v38 = vpop.f32.mrb[5].mxu1 }
 0x201   : > { %v2653_v39 = vadd.f32 %v1022_v38, %v2587_v7  ;;  %v1024_v40 = vpop.f32.mrb[6].mxu1  ;;  %1229 = vadd.xlane.f32.xlu1 %v1228_v36 }
 0x202   : > { %v1161_v41 = vmul.f32 %v2650_v37, %v2650_v37  ;;  %v2658_v42 = vadd.f32 %v1024_v40, %v2583_v56  ;;  %v1026_v43 = vpop.f32.mrb[7].mxu1 }
 0x203   : > { %v1162_v44 = vmul.f32 %v2653_v39, %v2653_v39  ;;  %v2663_v45 = vadd.f32 %v1026_v43, %v2587_v7 }
 0x204   : > { %v1163_v46 = vmul.f32 %v2658_v42, %v2658_v42 }
 0x205   : > { %v1164_v47 = vmul.f32 %v2663_v45, %v2663_v45  ;;  %v1231_v48 = vadd.f32 %v1162_v44, %v1161_v41 }
 0x207   : > { %v1030_v49 = vpop.f32.mrb[8].mxu1  ;;  %1232 = vadd.xlane.f32.xlu0 %v1231_v48  ;;  %v1234_v50 = vadd.f32 %v1164_v47, %v1163_v46 }
 0x208   : > { %v2670_v51 = vadd.f32 %v1030_v49, %v2583_v56  ;;  %v1032_v52 = vpop.f32.mrb[9].mxu1 }
 0x209   : > { %v2673_v53 = vadd.f32 %v1032_v52, %v2587_v7  ;;  %v1034_v54 = vpop.f32.mrb[10].mxu1  ;;  %1235 = vadd.xlane.f32.xlu1 %v1234_v50 }
 0x20a   : > { %v1165_v55 = vmul.f32 %v2670_v51, %v2670_v51  ;;  %v2678_v2 = vadd.f32 %v1034_v54, %v2583_v56  ;;  %v1036_v58 = vpop.f32.mrb[11].mxu1 }
 0x20b   : > { %v1166_v60 = vmul.f32 %v2673_v53, %v2673_v53  ;;  %v2683_v62 = vadd.f32 %v1036_v58, %v2587_v7 }
 0x20c   : > { %v1167_v4 = vmul.f32 %v2678_v2, %v2678_v2 }
 0x20d   : > { %v1168_v6 = vmul.f32 %v2683_v62, %v2683_v62  ;;  %v1237_v63 = vadd.f32 %v1166_v60, %v1165_v55 }
 0x20f   : > { %v1040_v0 = vpop.f32.mrb[12].mxu1  ;;  %1238 = vadd.xlane.f32.xlu0 %v1237_v63  ;;  %v1240_v1 = vadd.f32 %v1168_v6, %v1167_v4 }
 0x210   : > { %v2690_v5 = vadd.f32 %v1040_v0, %v2583_v56  ;;  %v1042_v9 = vpop.f32.mrb[13].mxu1 }
 0x211   : > { %v2693_v11 = vadd.f32 %v1042_v9, %v2587_v7  ;;  %v1044_v12 = vpop.f32.mrb[14].mxu1  ;;  %1241 = vadd.xlane.f32.xlu1 %v1240_v1 }
 0x212   : > { %v1169_v14 = vmul.f32 %v2690_v5, %v2690_v5  ;;  %v2698_v15 = vadd.f32 %v1044_v12, %v2583_v56  ;;  %v1046_v17 = vpop.f32.mrb[15].mxu1 }
 0x213   : > { %v1170_v18 = vmul.f32 %v2693_v11, %v2693_v11  ;;  %v2703_v19 = vadd.f32 %v1046_v17, %v2587_v7 }
 0x214   : > { %v1171_v20 = vmul.f32 %v2698_v15, %v2698_v15 }
 0x215   : > { %v1172_v21 = vmul.f32 %v2703_v19, %v2703_v19  ;;  %v1243_v23 = vadd.f32 %v1170_v18, %v1169_v14 }
 0x217   : > { %v1050_v25 = vpop.f32.mrb[16].mxu1  ;;  %1244 = vadd.xlane.f32.xlu0 %v1243_v23  ;;  %v1246_v26 = vadd.f32 %v1172_v21, %v1171_v20 }
 0x218   : > { %v2710_v27 = vadd.f32 %v1050_v25, %v2583_v56  ;;  %v1052_v29 = vpop.f32.mrb[17].mxu1 }
 0x219   : > { %v2713_v30 = vadd.f32 %v1052_v29, %v2587_v7  ;;  %v1054_v32 = vpop.f32.mrb[18].mxu1  ;;  %1247 = vadd.xlane.f32.xlu1 %v1246_v26 }
 0x21a   : > { %v1173_v33 = vmul.f32 %v2710_v27, %v2710_v27  ;;  %v2718_v34 = vadd.f32 %v1054_v32, %v2583_v56  ;;  %v1056_v35 = vpop.f32.mrb[19].mxu1 }
 0x21b   : > { %v1174_v36 = vmul.f32 %v2713_v30, %v2713_v30  ;;  %v2723_v38 = vadd.f32 %v1056_v35, %v2587_v7 }
 0x21c   : > { %v1175_v40 = vmul.f32 %v2718_v34, %v2718_v34 }
 0x21d   : > { %v1176_v41 = vmul.f32 %v2723_v38, %v2723_v38  ;;  %v1249_v43 = vadd.f32 %v1174_v36, %v1173_v33 }
 0x21f   : > { %v1060_v44 = vpop.f32.mrb[20].mxu1  ;;  %1250 = vadd.xlane.f32.xlu0 %v1249_v43  ;;  %v1252_v46 = vadd.f32 %v1176_v41, %v1175_v40 }
 0x220   : > { %v2730_v47 = vadd.f32 %v1060_v44, %v2583_v56  ;;  %v1062_v48 = vpop.f32.mrb[21].mxu1 }
 0x221   : > { %v2733_v49 = vadd.f32 %v1062_v48, %v2587_v7  ;;  %v1064_v50 = vpop.f32.mrb[22].mxu1  ;;  %1253 = vadd.xlane.f32.xlu1 %v1252_v46 }
 0x222   : > { %v1177_v52 = vmul.f32 %v2730_v47, %v2730_v47  ;;  %v2738_v54 = vadd.f32 %v1064_v50, %v2583_v56  ;;  %v1066_v55 = vpop.f32.mrb[23].mxu1 }
 0x223   : > { %v1178_v58 = vmul.f32 %v2733_v49, %v2733_v49  ;;  %v2743_v60 = vadd.f32 %v1066_v55, %v2587_v7 }
 0x224   : > { %v1179_v4 = vmul.f32 %v2738_v54, %v2738_v54 }
 0x225   : > { %v1180_v6 = vmul.f32 %v2743_v60, %v2743_v60  ;;  %v1255_v63 = vadd.f32 %v1178_v58, %v1177_v52 }
 0x227   : > { %v1070_v0 = vpop.f32.mrb[24].mxu1  ;;  %1256 = vadd.xlane.f32.xlu0 %v1255_v63  ;;  %v1258_v1 = vadd.f32 %v1180_v6, %v1179_v4 }
 0x228   : > { %v2750_v9 = vadd.f32 %v1070_v0, %v2583_v56  ;;  %v1072_v12 = vpop.f32.mrb[25].mxu1 }
 0x229   : > { %v2753_v14 = vadd.f32 %v1072_v12, %v2587_v7  ;;  %v1074_v17 = vpop.f32.mrb[26].mxu1  ;;  %1259 = vadd.xlane.f32.xlu1 %v1258_v1 }
 0x22a   : > { %v1181_v18 = vmul.f32 %v2750_v9, %v2750_v9  ;;  %v2758_v20 = vadd.f32 %v1074_v17, %v2583_v56  ;;  %v1076_v21 = vpop.f32.mrb[27].mxu1 }
 0x22b   : > { %v1182_v23 = vmul.f32 %v2753_v14, %v2753_v14  ;;  %v2763_v25 = vadd.f32 %v1076_v21, %v2587_v7 }
 0x22c   : > { %v1183_v26 = vmul.f32 %v2758_v20, %v2758_v20 }
 0x22d   : > { %v1184_v29 = vmul.f32 %v2763_v25, %v2763_v25  ;;  %v1261_v32 = vadd.f32 %v1182_v23, %v1181_v18 }
 0x22f   : > { %v1080_v33 = vpop.f32.mrb[28].mxu1  ;;  %1262 = vadd.xlane.f32.xlu0 %v1261_v32  ;;  %v1264_v35 = vadd.f32 %v1184_v29, %v1183_v26 }
 0x230   : > { %v2770_v36 = vadd.f32 %v1080_v33, %v2583_v56  ;;  %v1082_v40 = vpop.f32.mrb[29].mxu1 }
 0x231   : > { %v2773_v41 = vadd.f32 %v1082_v40, %v2587_v7  ;;  %v1084_v43 = vpop.f32.mrb[30].mxu1  ;;  %1265 = vadd.xlane.f32.xlu1 %v1264_v35 }
 0x232   : > { %v1185_v44 = vmul.f32 %v2770_v36, %v2770_v36  ;;  %v2778_v46 = vadd.f32 %v1084_v43, %v2583_v56  ;;  %v1086_v48 = vpop.f32.mrb[31].mxu1 }
 0x233   : > { %v1186_v50 = vmul.f32 %v2773_v41, %v2773_v41  ;;  %v2783_v52 = vadd.f32 %v1086_v48, %v2587_v7 }
 0x234   : > { %v1187_v55 = vmul.f32 %v2778_v46, %v2778_v46 }
 0x235   : > { %v1188_v58 = vmul.f32 %v2783_v52, %v2783_v52  ;;  %v1267_v4 = vadd.f32 %v1186_v50, %v1185_v44 }
 0x237   : > { %v1090_v6 = vpop.f32.mrb[32].mxu1  ;;  %1268 = vadd.xlane.f32.xlu0 %v1267_v4  ;;  %v1270_v63 = vadd.f32 %v1188_v58, %v1187_v55 }
 0x238   : > { %v2790_v0 = vadd.f32 %v1090_v6, %v2583_v56  ;;  %v1092_v1 = vpop.f32.mrb[33].mxu1 }
 0x239   : > { %v2793_v12 = vadd.f32 %v1092_v1, %v2587_v7  ;;  %v1094_v17 = vpop.f32.mrb[34].mxu1  ;;  %1271 = vadd.xlane.f32.xlu1 %v1270_v63 }
 0x23a   : > { %v1189_v18 = vmul.f32 %v2790_v0, %v2790_v0  ;;  %v2798_v21 = vadd.f32 %v1094_v17, %v2583_v56  ;;  %v1096_v23 = vpop.f32.mrb[35].mxu1 }
 0x23b   : > { %v1190_v26 = vmul.f32 %v2793_v12, %v2793_v12  ;;  %v2803_v29 = vadd.f32 %v1096_v23, %v2587_v7 }
 0x23c   : > { %v1191_v32 = vmul.f32 %v2798_v21, %v2798_v21 }
 0x23d   : > { %v1192_v33 = vmul.f32 %v2803_v29, %v2803_v29  ;;  %v1273_v35 = vadd.f32 %v1190_v26, %v1189_v18 }
 0x23f   : > { %v1100_v40 = vpop.f32.mrb[36].mxu1  ;;  %1274 = vadd.xlane.f32.xlu0 %v1273_v35  ;;  %v1276_v43 = vadd.f32 %v1192_v33, %v1191_v32 }
 0x240   : > { %v2810_v44 = vadd.f32 %v1100_v40, %v2583_v56  ;;  %v1102_v48 = vpop.f32.mrb[37].mxu1 }
 0x241   : > { %v2813_v50 = vadd.f32 %v1102_v48, %v2587_v7  ;;  %v1104_v55 = vpop.f32.mrb[38].mxu1  ;;  %1277 = vadd.xlane.f32.xlu1 %v1276_v43 }
 0x242   : > { %v1193_v58 = vmul.f32 %v2810_v44, %v2810_v44  ;;  %v2818_v4 = vadd.f32 %v1104_v55, %v2583_v56  ;;  %v1106_v6 = vpop.f32.mrb[39].mxu1 }
 0x243   : > { %3161 = vst [vmem:[#allocation5_spill] sm:$0xff] %v2813_v50  ;;  %v1194_v63 = vmul.f32 %v2813_v50, %v2813_v50  ;;  %v2823_v1 = vadd.f32 %v1106_v6, %v2587_v7 }
 0x244   : > { %3162 = vst [vmem:[#allocation6_spill] sm:$0xff] %v2818_v4  ;;  %v1195_v17 = vmul.f32 %v2818_v4, %v2818_v4 }
 0x245   : > { %3163 = vst [vmem:[#allocation7_spill] sm:$0xff] %v2823_v1  ;;  %v1196_v18 = vmul.f32 %v2823_v1, %v2823_v1  ;;  %v1279_v23 = vadd.f32 %v1194_v63, %v1193_v58 }
 0x247   : > { %v1110_v26 = vpop.f32.mrb[40].mxu1  ;;  %1280 = vadd.xlane.f32.xlu0 %v1279_v23  ;;  %v1282_v32 = vadd.f32 %v1196_v18, %v1195_v17 }
 0x248   : > { %v2830_v33 = vadd.f32 %v1110_v26, %v2583_v56  ;;  %v1112_v35 = vpop.f32.mrb[41].mxu1 }
 0x249   : > { %v2833_v40 = vadd.f32 %v1112_v35, %v2587_v7  ;;  %v1114_v43 = vpop.f32.mrb[42].mxu1  ;;  %1283 = vadd.xlane.f32.xlu1 %v1282_v32 }
 0x24a   : > { %3164 = vst [vmem:[#allocation8_spill] sm:$0xff] %v2830_v33  ;;  %v1197_v48 = vmul.f32 %v2830_v33, %v2830_v33  ;;  %v2838_v55 = vadd.f32 %v1114_v43, %v2583_v56  ;;  %v1116_v6 = vpop.f32.mrb[43].mxu1 }
 0x24b   : > { %3165 = vst [vmem:[#allocation9_spill] sm:$0xff] %v2833_v40  ;;  %v1198_v58 = vmul.f32 %v2833_v40, %v2833_v40  ;;  %v2843_v63 = vadd.f32 %v1116_v6, %v2587_v7 }
 0x24c   : > { %3166 = vst [vmem:[#allocation10_spill] sm:$0xff] %v2838_v55  ;;  %v1199_v17 = vmul.f32 %v2838_v55, %v2838_v55 }
 0x24d   : > { %3167 = vst [vmem:[#allocation11_spill] sm:$0xff] %v2843_v63  ;;  %v1200_v18 = vmul.f32 %v2843_v63, %v2843_v63  ;;  %v1285_v23 = vadd.f32 %v1198_v58, %v1197_v48 }
 0x24f   : > { %v1120_v26 = vpop.f32.mrb[44].mxu1  ;;  %1286 = vadd.xlane.f32.xlu0 %v1285_v23  ;;  %v1288_v32 = vadd.f32 %v1200_v18, %v1199_v17 }
 0x250   : > { %v2850_v35 = vadd.f32 %v1120_v26, %v2583_v56  ;;  %v1122_v43 = vpop.f32.mrb[45].mxu1 }
 0x251   : > { %v2853_v33 = vadd.f32 %v1122_v43, %v2587_v7  ;;  %v1124_v40 = vpop.f32.mrb[46].mxu1  ;;  %1289 = vadd.xlane.f32.xlu1 %v1288_v32 }
 0x252   : > { %3168 = vst [vmem:[#allocation12_spill] sm:$0xff] %v2850_v35  ;;  %v1201_v6 = vmul.f32 %v2850_v35, %v2850_v35  ;;  %v2858_v55 = vadd.f32 %v1124_v40, %v2583_v56  ;;  %v1126_v63 = vpop.f32.mrb[47].mxu1 }
 0x253   : > { %3169 = vst [vmem:[#allocation13_spill] sm:$0xff] %v2853_v33  ;;  %v1202_v48 = vmul.f32 %v2853_v33, %v2853_v33  ;;  %v2863_v58 = vadd.f32 %v1126_v63, %v2587_v7 }
 0x254   : > { %3170 = vst [vmem:[#allocation14_spill] sm:$0xff] %v2858_v55  ;;  %v1203_v17 = vmul.f32 %v2858_v55, %v2858_v55 }
 0x255   : > { %3171 = vst [vmem:[#allocation15_spill] sm:$0xff] %v2863_v58  ;;  %v1204_v18 = vmul.f32 %v2863_v58, %v2863_v58  ;;  %v1291_v23 = vadd.f32 %v1202_v48, %v1201_v6 }
 0x257   : > { %v1130_v26 = vpop.f32.mrb[48].mxu1  ;;  %1292 = vadd.xlane.f32.xlu0 %v1291_v23  ;;  %v1294_v32 = vadd.f32 %v1204_v18, %v1203_v17 }
 0x258   : > { %v2870_v40 = vadd.f32 %v1130_v26, %v2583_v56  ;;  %v1132_v43 = vpop.f32.mrb[49].mxu1 }
 0x259   : > { %v2873_v35 = vadd.f32 %v1132_v43, %v2587_v7  ;;  %v1134_v33 = vpop.f32.mrb[50].mxu1  ;;  %1295 = vadd.xlane.f32.xlu1 %v1294_v32 }
 0x25a   : > { %3172 = vst [vmem:[#allocation16_spill] sm:$0xff] %v2870_v40  ;;  %v1205_v63 = vmul.f32 %v2870_v40, %v2870_v40  ;;  %v2878_v55 = vadd.f32 %v1134_v33, %v2583_v56  ;;  %v1136_v58 = vpop.f32.mrb[51].mxu1 }
 0x25b   : > { %3173 = vst [vmem:[#allocation17_spill] sm:$0xff] %v2873_v35  ;;  %v1206_v6 = vmul.f32 %v2873_v35, %v2873_v35  ;;  %v2883_v48 = vadd.f32 %v1136_v58, %v2587_v7 }
 0x25c   : > { %3174 = vst [vmem:[#allocation18_spill] sm:$0xff] %v2878_v55  ;;  %v1207_v17 = vmul.f32 %v2878_v55, %v2878_v55 }
 0x25d   : > { %3175 = vst [vmem:[#allocation19_spill] sm:$0xff] %v2883_v48  ;;  %v1208_v18 = vmul.f32 %v2883_v48, %v2883_v48  ;;  %v1297_v23 = vadd.f32 %v1206_v6, %v1205_v63 }
 0x25f   : > { %v1140_v26 = vpop.f32.mrb[52].mxu1  ;;  %1298 = vadd.xlane.f32.xlu0 %v1297_v23  ;;  %v1300_v32 = vadd.f32 %v1208_v18, %v1207_v17 }
 0x260   : > { %v2890_v33 = vadd.f32 %v1140_v26, %v2583_v56  ;;  %v1142_v43 = vpop.f32.mrb[53].mxu1 }
 0x261   : > { %v2893_v40 = vadd.f32 %v1142_v43, %v2587_v7  ;;  %v1144_v35 = vpop.f32.mrb[54].mxu1  ;;  %1301 = vadd.xlane.f32.xlu1 %v1300_v32 }
 0x262   : > { %3176 = vst [vmem:[#allocation20_spill] sm:$0xff] %v2890_v33  ;;  %v1209_v58 = vmul.f32 %v2890_v33, %v2890_v33  ;;  %v2898_v55 = vadd.f32 %v1144_v35, %v2583_v56  ;;  %v1146_v48 = vpop.f32.mrb[55].mxu1 }
 0x263   : > { %3177 = vst [vmem:[#allocation21_spill] sm:$0xff] %v2893_v40  ;;  %v1210_v63 = vmul.f32 %v2893_v40, %v2893_v40  ;;  %v2903_v6 = vadd.f32 %v1146_v48, %v2587_v7 }
 0x264   : > { %3178 = vst [vmem:[#allocation22_spill] sm:$0xff] %v2898_v55  ;;  %v1211_v17 = vmul.f32 %v2898_v55, %v2898_v55 }
 0x265   : > { %3179 = vst [vmem:[#allocation23_spill] sm:$0xff] %v2903_v6  ;;  %v1212_v18 = vmul.f32 %v2903_v6, %v2903_v6  ;;  %v1303_v23 = vadd.f32 %v1210_v63, %v1209_v58 }
 0x267   : > { %1304 = vadd.xlane.f32.xlu0 %v1303_v23  ;;  %v1306_v26 = vadd.f32 %v1212_v18, %v1211_v17 }
 0x269   : > { %1307 = vadd.xlane.f32.xlu1 %v1306_v26 }
 0x27c   : > { %v1215_v32 = vpop.xlane.xlu0 %1214 }
 0x27d   : > { %2043 = vrsqrt.f32 %v1215_v32  ;;  %vm1311_vm0 = vcmp.eq.f32.partialorder %v1215_v32, inf  ;;  %v1314_v48 = vand.u32 2147483648, %v1215_v32  ;;  %vm1313_vm1 = vcmp.eq.f32.partialorder %v1215_v32, 0.0 }
 0x280   : > { %v1218_v56 = vpop.xlane.xlu0 %1217 }
 0x281   : > { %2045 = vrsqrt.f32 %v1218_v56  ;;  %vm1318_vm2 = vcmp.eq.f32.partialorder %v1218_v56, inf  ;;  %v1321_v18 = vand.u32 2147483648, %v1218_v56  ;;  %vm1320_vm3 = vcmp.eq.f32.partialorder %v1218_v56, 0.0 }
 0x284   : > { %v1221_v35 = vpop.xlane.xlu1 %1220 }
 0x285   : > { %2047 = vrsqrt.f32 %v1221_v35  ;;  %vm1325_vm4 = vcmp.eq.f32.partialorder %v1221_v35, inf  ;;  %vm1327_vm5 = vcmp.eq.f32.partialorder %v1221_v35, 0.0 }
 0x287   : > { %v2044_v43 = vpop.eup %2043 }
 0x288   : > { %v1310_v40 = vmul.f32 %v2044_v43, %v1215_v32  ;;  %v1224_v7 = vpop.xlane.xlu1 %1223 }
 0x289   : > { %2049 = vrsqrt.f32 %v1224_v7  ;;  %vm1332_vm6 = vcmp.eq.f32.partialorder %v1224_v7, inf  ;;  %vm1334_vm7 = vcmp.eq.f32.partialorder %v1224_v7, 0.0 }
 0x28a   : > { %v1312_v55 = vsel %vm1311_vm0, %v1215_v32, %v1310_v40  ;;  %v1328_v32 = vand.u32 2147483648, %v1221_v35 }
 0x28b   : > { %v2046_v33 = vpop.eup %2045  ;;  %v1315_v6 = vsel %vm1313_vm1, %v1314_v48, %v1312_v55 }
 0x28c   : > { %v1533_v58 = vadd.f32 1e-07, %v1315_v6  ;;  %v1317_v63 = vmul.f32 %v2046_v33, %v1218_v56  ;;  %v1227_v17 = vpop.xlane.xlu0 %1226 }
 0x28d   : > { %2051 = vrsqrt.f32 %v1227_v17  ;;  %vm1339_vm8 = vcmp.eq.f32.partialorder %v1227_v17, inf  ;;  %vm1341_vm9 = vcmp.eq.f32.partialorder %v1227_v17, 0.0 }
 0x28e   : > { %2053 = vrcp.f32 %v1533_v58  ;;  %v1319_v23 = vsel %vm1318_vm2, %v1218_v56, %v1317_v63  ;;  %v1230_v26 = vpop.xlane.xlu1 %1229  ;;  %v1335_v56 = vand.u32 2147483648, %v1224_v7 }
 0x28f   : > { %v2048_v43 = vpop.eup %2047  ;;  %v1322_v1 = vsel %vm1320_vm3, %v1321_v18, %v1319_v23  ;;  %2055 = vrsqrt.f32 %v1230_v26  ;;  %vm1346_vm10 = vcmp.eq.f32.partialorder %v1230_v26, inf  ;;  %vm1348_vm11 = vcmp.eq.f32.partialorder %v1230_v26, 0.0 }
 0x290   : > { %v1534_v4 = vadd.f32 1e-07, %v1322_v1  ;;  %v1324_v40 = vmul.f32 %v2048_v43, %v1221_v35 }
 0x292   : > { %2057 = vrcp.f32 %v1534_v4  ;;  %v1326_v55 = vsel %vm1325_vm4, %v1221_v35, %v1324_v40 }
 0x293   : > { %v2050_v33 = vpop.eup %2049  ;;  %v1329_v6 = vsel %vm1327_vm5, %v1328_v32, %v1326_v55 }
 0x294   : > { %v1535_v48 = vadd.f32 1e-07, %v1329_v6  ;;  %v1331_v50 = vmul.f32 %v2050_v33, %v1224_v7  ;;  %v1233_v58 = vpop.xlane.xlu0 %1232  ;;  %v1342_v33 = vand.u32 2147483648, %v1227_v17 }
 0x295   : > { %2059 = vrsqrt.f32 %v1233_v58  ;;  %vm1353_vm12 = vcmp.eq.f32.partialorder %v1233_v58, inf  ;;  %vm1355_vm13 = vcmp.eq.f32.partialorder %v1233_v58, 0.0 }
 0x296   : > { %2061 = vrcp.f32 %v1535_v48  ;;  %v1333_v63 = vsel %vm1332_vm6, %v1224_v7, %v1331_v50  ;;  %v2912_v1 = vpop.xlane.xlu1 %1235  ;;  %v1349_v48 = vand.u32 2147483648, %v1230_v26 }
 0x297   : > { %v2052_v18 = vpop.eup %2051  ;;  %v1336_v23 = vsel %vm1334_vm7, %v1335_v56, %v1333_v63  ;;  %2063 = vrsqrt.f32 %v2912_v1  ;;  %vm1360_vm14 = vcmp.eq.f32.partialorder %v2912_v1, inf  ;;  %vm1362_vm15 = vcmp.eq.f32.partialorder %v2912_v1, 0.0 }
 0x298   : > { %v2054_v4 = vpop.eup %2053  ;;  %v1536_v35 = vadd.f32 1e-07, %v1336_v23  ;;  %v1338_v43 = vmul.f32 %v2052_v18, %v1227_v17 }
 0x299   : > { %v2056_v40 = vpop.eup %2055  ;;  %v1597_v32 = vmul.f32 %v2054_v4, %v2590_v57  ;;  %v1598_v55 = vmul.f32 %v2054_v4, %v2593_v59 }
 0x29a   : > { %2065 = vrcp.f32 %v1536_v35  ;;  %v1340_v6 = vsel %vm1339_vm8, %v1227_v17, %v1338_v43  ;;  %v1345_v50 = vmul.f32 %v2056_v40, %v1230_v26 }
 0x29b   : > { %1661 = vst [vmem:[%s2917_s26] sm:$0xff] %v1597_v32  ;;  %1662 = vst [vmem:[%s2917_s26 + $0x8] sm:$0xff] %v1598_v55  ;;  %v1343_v7 = vsel %vm1341_vm9, %v1342_v33, %v1340_v6  ;;  %v1356_v55 = vand.u32 2147483648, %v1233_v58 }
 0x29c   : > { %v2058_v57 = vpop.eup %2057  ;;  %v1537_v56 = vadd.f32 1e-07, %v1343_v7  ;;  %v1347_v59 = vsel %vm1346_vm10, %v1230_v26, %v1345_v50  ;;  %v2921_v63 = vpop.xlane.xlu0 %1238  ;;  %v1363_v7 = vand.u32 2147483648, %v2912_v1 }
 0x29d   : > { %v1599_v17 = vmul.f32 %v2058_v57, %v2596_v61  ;;  %v1600_v18 = vmul.f32 %v2058_v57, %v2601_v3  ;;  %v1350_v23 = vsel %vm1348_vm11, %v1349_v48, %v1347_v59  ;;  %2067 = vrsqrt.f32 %v2921_v63 }
 0x29e   : > { %2069 = vrcp.f32 %v1537_v56  ;;  %v1538_v4 = vadd.f32 1e-07, %v1350_v23  ;;  %v2926_v35 = vpop.xlane.xlu1 %1241  ;;  %vm1367_vm0 = vcmp.eq.f32.partialorder %v2921_v63, inf  ;;  %vm1369_vm1 = vcmp.eq.f32.partialorder %v2921_v63, 0.0 }
 0x29f   : > { %v2060_v43 = vpop.eup %2059  ;;  %1663 = vst [vmem:[%s2917_s26 + $0x10] sm:$0xff] %v1599_v17  ;;  %1664 = vst [vmem:[%s2917_s26 + $0x18] sm:$0xff] %v1600_v18  ;;  %2071 = vrsqrt.f32 %v2926_v35  ;;  %vm1374_vm2 = vcmp.eq.f32.partialorder %v2926_v35, inf  ;;  %vm1376_vm3 = vcmp.eq.f32.partialorder %v2926_v35, 0.0 }
 0x2a0   : > { %v2062_v26 = vpop.eup %2061  ;;  %2073 = vrcp.f32 %v1538_v4  ;;  %v1352_v40 = vmul.f32 %v2060_v43, %v1233_v58 }
 0x2a1   : > { %v2064_v61 = vpop.eup %2063  ;;  %v1601_v3 = vmul.f32 %v2062_v26, %v2610_v8  ;;  %v1602_v32 = vmul.f32 %v2062_v26, %v2613_v10  ;;  %v1370_v26 = vand.u32 2147483648, %v2921_v63 }
 0x2a2   : > { %v1354_v33 = vsel %vm1353_vm12, %v1233_v58, %v1352_v40  ;;  %v1359_v6 = vmul.f32 %v2064_v61, %v2912_v1 }
 0x2a3   : > { %1665 = vst [vmem:[%s2917_s26 + $0x20] sm:$0xff] %v1601_v3  ;;  %1666 = vst [vmem:[%s2917_s26 + $0x28] sm:$0xff] %v1602_v32  ;;  %v1357_v50 = vsel %vm1355_vm13, %v1356_v55, %v1354_v33  ;;  %v1377_v55 = vand.u32 2147483648, %v2926_v35 }
 0x2a4   : > { %v2066_v48 = vpop.eup %2065  ;;  %v1539_v57 = vadd.f32 1e-07, %v1357_v50  ;;  %v1361_v8 = vsel %vm1360_vm14, %v2912_v1, %v1359_v6  ;;  %v2940_v10 = vpop.xlane.xlu0 %1244 }
 0x2a5   : > { %v1603_v58 = vmul.f32 %v2066_v48, %v2616_v13  ;;  %v1604_v56 = vmul.f32 %v2066_v48, %v2621_v16  ;;  %v1364_v59 = vsel %vm1362_vm15, %v1363_v7, %v1361_v8  ;;  %2075 = vrsqrt.f32 %v2940_v10 }
 0x2a6   : > { %2077 = vrcp.f32 %v1539_v57  ;;  %v1540_v17 = vadd.f32 1e-07, %v1364_v59  ;;  %v2945_v18 = vpop.xlane.xlu1 %1247  ;;  %vm1381_vm4 = vcmp.eq.f32.partialorder %v2940_v10, inf  ;;  %vm1383_vm5 = vcmp.eq.f32.partialorder %v2940_v10, 0.0 }
 0x2a7   : > { %v2068_v23 = vpop.eup %2067  ;;  %1667 = vst [vmem:[%s2917_s26 + $0x30] sm:$0xff] %v1603_v58  ;;  %1668 = vst [vmem:[%s2917_s26 + $0x38] sm:$0xff] %v1604_v56  ;;  %2079 = vrsqrt.f32 %v2945_v18  ;;  %v1384_v56 = vand.u32 2147483648, %v2940_v10  ;;  %vm1388_vm6 = vcmp.eq.f32.partialorder %v2945_v18, inf  ;;  %vm1390_vm7 = vcmp.eq.f32.partialorder %v2945_v18, 0.0 }
 0x2a8   : > { %v2070_v1 = vpop.eup %2069  ;;  %2081 = vrcp.f32 %v1540_v17  ;;  %v1366_v13 = vmul.f32 %v2068_v23, %v2921_v63 }
 0x2a9   : > { %v2072_v4 = vpop.eup %2071  ;;  %v1605_v16 = vmul.f32 %v2070_v1, %v2630_v22  ;;  %v1606_v43 = vmul.f32 %v2070_v1, %v2633_v24 }
 0x2aa   : > { %v2074_v40 = vpop.eup %2073  ;;  %v1368_v61 = vsel %vm1367_vm0, %v2921_v63, %v1366_v13  ;;  %v1373_v3 = vmul.f32 %v2072_v4, %v2926_v35  ;;  %v1391_v13 = vand.u32 2147483648, %v2945_v18 }
 0x2ab   : > { %1669 = vst [vmem:[%s2917_s26 + $0x40] sm:$0xff] %v1605_v16  ;;  %1670 = vst [vmem:[%s2917_s26 + $0x48] sm:$0xff] %v1606_v43  ;;  %v1607_v22 = vmul.f32 %v2074_v40, %v2638_v28  ;;  %v1608_v24 = vmul.f32 %v2074_v40, %v2643_v31  ;;  %v1371_v32 = vsel %vm1369_vm1, %v1370_v26, %v1368_v61 }
 0x2ac   : > { %v1541_v33 = vadd.f32 1e-07, %v1371_v32  ;;  %v1375_v6 = vsel %vm1374_vm2, %v2926_v35, %v1373_v3  ;;  %v1251_v50 = vpop.xlane.xlu0 %1250 }
 0x2ad   : > { %1671 = vst [vmem:[%s2917_s26 + $0x50] sm:$0xff] %v1607_v22  ;;  %1672 = vst [vmem:[%s2917_s26 + $0x58] sm:$0xff] %v1608_v24  ;;  %v1378_v63 = vsel %vm1376_vm3, %v1377_v55, %v1375_v6  ;;  %2083 = vrsqrt.f32 %v1251_v50  ;;  %vm1395_vm8 = vcmp.eq.f32.partialorder %v1251_v50, inf  ;;  %v1398_v24 = vand.u32 2147483648, %v1251_v50 }
 0x2ae   : > { %2085 = vrcp.f32 %v1541_v33  ;;  %v1542_v7 = vadd.f32 1e-07, %v1378_v63  ;;  %v1254_v48 = vpop.xlane.xlu1 %1253  ;;  %vm1397_vm9 = vcmp.eq.f32.partialorder %v1251_v50, 0.0 }
 0x2af   : > { %v2076_v28 = vpop.eup %2075  ;;  %2087 = vrsqrt.f32 %v1254_v48  ;;  %vm1402_vm10 = vcmp.eq.f32.partialorder %v1254_v48, inf  ;;  %vm1404_vm11 = vcmp.eq.f32.partialorder %v1254_v48, 0.0 }
 0x2b0   : > { %v2078_v31 = vpop.eup %2077  ;;  %2089 = vrcp.f32 %v1542_v7  ;;  %v1380_v57 = vmul.f32 %v2076_v28, %v2940_v10  ;;  %v1405_v28 = vand.u32 2147483648, %v1254_v48 }
 0x2b1   : > { %v2080_v8 = vpop.eup %2079  ;;  %v1609_v58 = vmul.f32 %v2078_v31, %v2650_v37  ;;  %v1610_v35 = vmul.f32 %v2078_v31, %v2653_v39 }
 0x2b2   : > { %v2082_v59 = vpop.eup %2081  ;;  %v1382_v17 = vsel %vm1381_vm4, %v2940_v10, %v1380_v57  ;;  %v1387_v23 = vmul.f32 %v2080_v8, %v2945_v18 }
 0x2b3   : > { %1673 = vst [vmem:[%s2917_s26 + $0x60] sm:$0xff] %v1609_v58  ;;  %1674 = vst [vmem:[%s2917_s26 + $0x68] sm:$0xff] %v1610_v35  ;;  %v1611_v37 = vmul.f32 %v2082_v59, %v2658_v42  ;;  %v1612_v39 = vmul.f32 %v2082_v59, %v2663_v45  ;;  %v1385_v1 = vsel %vm1383_vm5, %v1384_v56, %v1382_v17 }
 0x2b4   : > { %v1543_v4 = vadd.f32 1e-07, %v1385_v1  ;;  %v1389_v16 = vsel %vm1388_vm6, %v2945_v18, %v1387_v23  ;;  %v1257_v43 = vpop.xlane.xlu0 %1256 }
 0x2b5   : > { %1675 = vst [vmem:[%s2917_s26 + $0x70] sm:$0xff] %v1611_v37  ;;  %1676 = vst [vmem:[%s2917_s26 + $0x78] sm:$0xff] %v1612_v39  ;;  %v1392_v10 = vsel %vm1390_vm7, %v1391_v13, %v1389_v16  ;;  %2091 = vrsqrt.f32 %v1257_v43  ;;  %vm1409_vm12 = vcmp.eq.f32.partialorder %v1257_v43, inf  ;;  %v1412_v59 = vand.u32 2147483648, %v1257_v43 }
 0x2b6   : > { %2093 = vrcp.f32 %v1543_v4  ;;  %v1544_v26 = vadd.f32 1e-07, %v1392_v10  ;;  %v1260_v40 = vpop.xlane.xlu1 %1259  ;;  %vm1411_vm13 = vcmp.eq.f32.partialorder %v1257_v43, 0.0 }
 0x2b7   : > { %v2084_v42 = vpop.eup %2083  ;;  %2095 = vrsqrt.f32 %v1260_v40  ;;  %vm1416_vm14 = vcmp.eq.f32.partialorder %v1260_v40, inf  ;;  %v1419_v4 = vand.u32 2147483648, %v1260_v40  ;;  %vm1418_vm15 = vcmp.eq.f32.partialorder %v1260_v40, 0.0 }
 0x2b8   : > { %v2086_v45 = vpop.eup %2085  ;;  %2097 = vrcp.f32 %v1544_v26  ;;  %v1394_v61 = vmul.f32 %v2084_v42, %v1251_v50 }
 0x2b9   : > { %v2088_v3 = vpop.eup %2087  ;;  %v1613_v22 = vmul.f32 %v2086_v45, %v2670_v51  ;;  %v1614_v18 = vmul.f32 %v2086_v45, %v2673_v53 }
 0x2ba   : > { %v2090_v32 = vpop.eup %2089  ;;  %v1396_v55 = vsel %vm1395_vm8, %v1251_v50, %v1394_v61  ;;  %v1401_v33 = vmul.f32 %v2088_v3, %v1254_v48 }
 0x2bb   : > { %1677 = vst [vmem:[%s2917_s26 + $0x80] sm:$0xff] %v1613_v22  ;;  %1678 = vst [vmem:[%s2917_s26 + $0x88] sm:$0xff] %v1614_v18  ;;  %v1615_v6 = vmul.f32 %v2090_v32, %v2678_v2  ;;  %v1616_v63 = vmul.f32 %v2090_v32, %v2683_v62  ;;  %v1399_v7 = vsel %vm1397_vm9, %v1398_v24, %v1396_v55 }
 0x2bc   : > { %v1545_v51 = vadd.f32 1e-07, %v1399_v7  ;;  %v1403_v31 = vsel %vm1402_vm10, %v1254_v48, %v1401_v33  ;;  %v1263_v53 = vpop.xlane.xlu0 %1262 }
 0x2bd   : > { %1679 = vst [vmem:[%s2917_s26 + $0x90] sm:$0xff] %v1615_v6  ;;  %1680 = vst [vmem:[%s2917_s26 + $0x98] sm:$0xff] %v1616_v63  ;;  %v1406_v57 = vsel %vm1404_vm11, %v1405_v28, %v1403_v31  ;;  %2099 = vrsqrt.f32 %v1263_v53  ;;  %vm1423_vm0 = vcmp.eq.f32.partialorder %v1263_v53, inf  ;;  %v1426_v3 = vand.u32 2147483648, %v1263_v53 }
 0x2be   : > { %2101 = vrcp.f32 %v1545_v51  ;;  %v1546_v50 = vadd.f32 1e-07, %v1406_v57  ;;  %v1266_v8 = vpop.xlane.xlu1 %1265  ;;  %vm1425_vm1 = vcmp.eq.f32.partialorder %v1263_v53, 0.0 }
 0x2bf   : > { %v2092_v58 = vpop.eup %2091  ;;  %2103 = vrsqrt.f32 %v1266_v8  ;;  %vm1430_vm2 = vcmp.eq.f32.partialorder %v1266_v8, inf  ;;  %v1433_v6 = vand.u32 2147483648, %v1266_v8  ;;  %vm1432_vm3 = vcmp.eq.f32.partialorder %v1266_v8, 0.0 }
 0x2c0   : > { %v2094_v2 = vpop.eup %2093  ;;  %2105 = vrcp.f32 %v1546_v50  ;;  %v1408_v62 = vmul.f32 %v2092_v58, %v1257_v43 }
 0x2c1   : > { %v2096_v35 = vpop.eup %2095  ;;  %v1617_v56 = vmul.f32 %v2094_v2, %v2690_v5  ;;  %v1618_v48 = vmul.f32 %v2094_v2, %v2693_v11 }
 0x2c2   : > { %v2098_v17 = vpop.eup %2097  ;;  %v1410_v23 = vsel %vm1409_vm12, %v1257_v43, %v1408_v62  ;;  %v1415_v37 = vmul.f32 %v2096_v35, %v1260_v40 }
 0x2c3   : > { %1681 = vst [vmem:[%s2917_s26 + $0xa0] sm:$0xff] %v1617_v56  ;;  %1682 = vst [vmem:[%s2917_s26 + $0xa8] sm:$0xff] %v1618_v48  ;;  %v1619_v39 = vmul.f32 %v2098_v17, %v2698_v15  ;;  %v1620_v1 = vmul.f32 %v2098_v17, %v2703_v19  ;;  %v1413_v13 = vsel %vm1411_vm13, %v1412_v59, %v1410_v23 }
 0x2c4   : > { %v1547_v5 = vadd.f32 1e-07, %v1413_v13  ;;  %v1417_v16 = vsel %vm1416_vm14, %v1260_v40, %v1415_v37  ;;  %v1269_v11 = vpop.xlane.xlu0 %1268 }
 0x2c5   : > { %1683 = vst [vmem:[%s2917_s26 + $0xb0] sm:$0xff] %v1619_v39  ;;  %1684 = vst [vmem:[%s2917_s26 + $0xb8] sm:$0xff] %v1620_v1  ;;  %v1420_v10 = vsel %vm1418_vm15, %v1419_v4, %v1417_v16  ;;  %2107 = vrsqrt.f32 %v1269_v11  ;;  %vm1437_vm4 = vcmp.eq.f32.partialorder %v1269_v11, inf  ;;  %vm1439_vm5 = vcmp.eq.f32.partialorder %v1269_v11, 0.0 }
 0x2c6   : > { %2109 = vrcp.f32 %v1547_v5  ;;  %v1548_v43 = vadd.f32 1e-07, %v1420_v10  ;;  %v1272_v26 = vpop.xlane.xlu1 %1271 }
 0x2c7   : > { %v2100_v42 = vpop.eup %2099  ;;  %2111 = vrsqrt.f32 %v1272_v26  ;;  %vm1444_vm6 = vcmp.eq.f32.partialorder %v1272_v26, inf  ;;  %v1447_v59 = vand.u32 2147483648, %v1272_v26  ;;  %vm1446_vm7 = vcmp.eq.f32.partialorder %v1272_v26, 0.0 }
 0x2c8   : > { %v2102_v15 = vpop.eup %2101  ;;  %2113 = vrcp.f32 %v1548_v43  ;;  %v1422_v19 = vmul.f32 %v2100_v42, %v1263_v53 }
 0x2c9   : > { %v2104_v45 = vpop.eup %2103  ;;  %v1621_v61 = vmul.f32 %v2102_v15, %v2710_v27  ;;  %v1622_v40 = vmul.f32 %v2102_v15, %v2713_v30 }
 0x2ca   : > { %v2106_v22 = vpop.eup %2105  ;;  %v1424_v18 = vsel %vm1423_vm0, %v1263_v53, %v1422_v19  ;;  %v1429_v24 = vmul.f32 %v2104_v45, %v1266_v8 }
 0x2cb   : > { %1685 = vst [vmem:[%s2917_s26 + $0xc0] sm:$0xff] %v1621_v61  ;;  %1686 = vst [vmem:[%s2917_s26 + $0xc8] sm:$0xff] %v1622_v40  ;;  %v1623_v32 = vmul.f32 %v2106_v22, %v2718_v34  ;;  %v1624_v55 = vmul.f32 %v2106_v22, %v2723_v38  ;;  %v1427_v33 = vsel %vm1425_vm1, %v1426_v3, %v1424_v18 }
 0x2cc   : > { %v1549_v27 = vadd.f32 1e-07, %v1427_v33  ;;  %v1431_v63 = vsel %vm1430_vm2, %v1266_v8, %v1429_v24  ;;  %v1275_v30 = vpop.xlane.xlu0 %1274  ;;  %v1440_v8 = vand.u32 2147483648, %v1269_v11 }
 0x2cd   : > { %1687 = vst [vmem:[%s2917_s26 + $0xd0] sm:$0xff] %v1623_v32  ;;  %1688 = vst [vmem:[%s2917_s26 + $0xd8] sm:$0xff] %v1624_v55  ;;  %v1434_v7 = vsel %vm1432_vm3, %v1433_v6, %v1431_v63  ;;  %2115 = vrsqrt.f32 %v1275_v30  ;;  %vm1451_vm8 = vcmp.eq.f32.partialorder %v1275_v30, inf  ;;  %v1454_v16 = vand.u32 2147483648, %v1275_v30 }
 0x2ce   : > { %2117 = vrcp.f32 %v1549_v27  ;;  %v1550_v28 = vadd.f32 1e-07, %v1434_v7  ;;  %v1278_v51 = vpop.xlane.xlu1 %1277  ;;  %vm1453_vm9 = vcmp.eq.f32.partialorder %v1275_v30, 0.0 }
 0x2cf   : > { %v2108_v31 = vpop.eup %2107  ;;  %2119 = vrsqrt.f32 %v1278_v51  ;;  %vm1458_vm10 = vcmp.eq.f32.partialorder %v1278_v51, inf  ;;  %v1461_v19 = vand.u32 2147483648, %v1278_v51  ;;  %vm1460_vm11 = vcmp.eq.f32.partialorder %v1278_v51, 0.0 }
 0x2d0   : > { %v2110_v34 = vpop.eup %2109  ;;  %2121 = vrcp.f32 %v1550_v28  ;;  %v1436_v38 = vmul.f32 %v2108_v31, %v1269_v11 }
 0x2d1   : > { %v2112_v53 = vpop.eup %2111  ;;  %v1625_v57 = vmul.f32 %v2110_v34, %v2730_v47  ;;  %v1626_v50 = vmul.f32 %v2110_v34, %v2733_v49 }
 0x2d2   : > { %v2114_v58 = vpop.eup %2113  ;;  %v1438_v2 = vsel %vm1437_vm4, %v1269_v11, %v1436_v38  ;;  %v1443_v62 = vmul.f32 %v2112_v53, %v1272_v26 }
 0x2d3   : > { %1689 = vst [vmem:[%s2917_s26 + $0xe0] sm:$0xff] %v1625_v57  ;;  %1690 = vst [vmem:[%s2917_s26 + $0xe8] sm:$0xff] %v1626_v50  ;;  %v1627_v35 = vmul.f32 %v2114_v58, %v2738_v54  ;;  %v1628_v56 = vmul.f32 %v2114_v58, %v2743_v60  ;;  %v1441_v48 = vsel %vm1439_vm5, %v1440_v8, %v1438_v2 }
 0x2d4   : > { %v1551_v47 = vadd.f32 1e-07, %v1441_v48  ;;  %v1445_v17 = vsel %vm1444_vm6, %v1272_v26, %v1443_v62  ;;  %v1281_v49 = vpop.xlane.xlu0 %1280 }
 0x2d5   : > { %1691 = vst [vmem:[%s2917_s26 + $0xf0] sm:$0xff] %v1627_v35  ;;  %1692 = vst [vmem:[%s2917_s26 + $0xf8] sm:$0xff] %v1628_v56  ;;  %v1448_v23 = vsel %vm1446_vm7, %v1447_v59, %v1445_v17  ;;  %2123 = vrsqrt.f32 %v1281_v49  ;;  %vm1465_vm12 = vcmp.eq.f32.partialorder %v1281_v49, inf  ;;  %v1468_v55 = vand.u32 2147483648, %v1281_v49 }
 0x2d6   : > { %2125 = vrcp.f32 %v1551_v47  ;;  %v1552_v37 = vadd.f32 1e-07, %v1448_v23  ;;  %v1284_v39 = vpop.xlane.xlu1 %1283  ;;  %vm1467_vm13 = vcmp.eq.f32.partialorder %v1281_v49, 0.0 }
 0x2d7   : > { %v2116_v1 = vpop.eup %2115  ;;  %2127 = vrsqrt.f32 %v1284_v39  ;;  %vm1472_vm14 = vcmp.eq.f32.partialorder %v1284_v39, inf  ;;  %v1475_v28 = vand.u32 2147483648, %v1284_v39  ;;  %vm1474_vm15 = vcmp.eq.f32.partialorder %v1284_v39, 0.0 }
 0x2d8   : > { %v2118_v54 = vpop.eup %2117  ;;  %2129 = vrcp.f32 %v1552_v37  ;;  %v1450_v60 = vmul.f32 %v2116_v1, %v1275_v30 }
 0x2d9   : > { %v2120_v13 = vpop.eup %2119  ;;  %v1629_v4 = vmul.f32 %v2118_v54, %v2750_v9  ;;  %v1630_v5 = vmul.f32 %v2118_v54, %v2753_v14 }
 0x2da   : > { %v2122_v11 = vpop.eup %2121  ;;  %v1452_v10 = vsel %vm1451_vm8, %v1275_v30, %v1450_v60  ;;  %v1457_v43 = vmul.f32 %v2120_v13, %v1278_v51  ;;  %v3180_v60 = vld [vmem:[#allocation5_spill] sm:$0xff] }
 0x2db   : > { %1693 = vst [vmem:[%s2917_s26 + $0x100] sm:$0xff] %v1629_v4  ;;  %1694 = vst [vmem:[%s2917_s26 + $0x108] sm:$0xff] %v1630_v5  ;;  %v1631_v26 = vmul.f32 %v2122_v11, %v2758_v20  ;;  %v1632_v42 = vmul.f32 %v2122_v11, %v2763_v25  ;;  %v1455_v15 = vsel %vm1453_vm9, %v1454_v16, %v1452_v10  ;;  %v3181_v10 = vld [vmem:[#allocation6_spill] sm:$0xff] }
 0x2dc   : > { %v1553_v9 = vadd.f32 1e-07, %v1455_v15  ;;  %v1459_v45 = vsel %vm1458_vm10, %v1278_v51, %v1457_v43  ;;  %v1287_v14 = vpop.xlane.xlu0 %1286 }
 0x2dd   : > { %1695 = vst [vmem:[%s2917_s26 + $0x110] sm:$0xff] %v1631_v26  ;;  %1696 = vst [vmem:[%s2917_s26 + $0x118] sm:$0xff] %v1632_v42  ;;  %v1462_v61 = vsel %vm1460_vm11, %v1461_v19, %v1459_v45  ;;  %2131 = vrsqrt.f32 %v1287_v14  ;;  %vm1479_vm0 = vcmp.eq.f32.partialorder %v1287_v14, inf  ;;  %v1482_v58 = vand.u32 2147483648, %v1287_v14  ;;  %v3182_v26 = vld [vmem:[#allocation7_spill] sm:$0xff] }
 0x2de   : > { %2133 = vrcp.f32 %v1553_v9  ;;  %v1554_v40 = vadd.f32 1e-07, %v1462_v61  ;;  %v1290_v3 = vpop.xlane.xlu1 %1289  ;;  %vm1481_vm1 = vcmp.eq.f32.partialorder %v1287_v14, 0.0 }
 0x2df   : > { %v2124_v22 = vpop.eup %2123  ;;  %2135 = vrsqrt.f32 %v1290_v3  ;;  %vm1486_vm2 = vcmp.eq.f32.partialorder %v1290_v3, inf  ;;  %v1489_v47 = vand.u32 2147483648, %v1290_v3  ;;  %vm1488_vm3 = vcmp.eq.f32.partialorder %v1290_v3, 0.0 }
 0x2e0   : > { %v2126_v20 = vpop.eup %2125  ;;  %2137 = vrcp.f32 %v1554_v40  ;;  %v1464_v25 = vmul.f32 %v2124_v22, %v1281_v49 }
 0x2e1   : > { %v2128_v18 = vpop.eup %2127  ;;  %v1633_v24 = vmul.f32 %v2126_v20, %v2770_v36  ;;  %v1634_v32 = vmul.f32 %v2126_v20, %v2773_v41 }
 0x2e2   : > { %v2130_v33 = vpop.eup %2129  ;;  %v1466_v6 = vsel %vm1465_vm12, %v1281_v49, %v1464_v25  ;;  %v1471_v27 = vmul.f32 %v2128_v18, %v1284_v39  ;;  %v3183_v18 = vld [vmem:[#allocation8_spill] sm:$0xff] }
 0x2e3   : > { %1697 = vst [vmem:[%s2917_s26 + $0x120] sm:$0xff] %v1633_v24  ;;  %1698 = vst [vmem:[%s2917_s26 + $0x128] sm:$0xff] %v1634_v32  ;;  %v1635_v63 = vmul.f32 %v2130_v33, %v2778_v46  ;;  %v1636_v30 = vmul.f32 %v2130_v33, %v2783_v52  ;;  %v1469_v7 = vsel %vm1467_vm13, %v1468_v55, %v1466_v6  ;;  %v3184_v32 = vld [vmem:[#allocation9_spill] sm:$0xff] }
 0x2e4   : > { %v1555_v36 = vadd.f32 1e-07, %v1469_v7  ;;  %v1473_v51 = vsel %vm1472_vm14, %v1284_v39, %v1471_v27  ;;  %v1293_v41 = vpop.xlane.xlu0 %1292 }
 0x2e5   : > { %1699 = vst [vmem:[%s2917_s26 + $0x130] sm:$0xff] %v1635_v63  ;;  %1700 = vst [vmem:[%s2917_s26 + $0x138] sm:$0xff] %v1636_v30  ;;  %v1476_v31 = vsel %vm1474_vm15, %v1475_v28, %v1473_v51  ;;  %2139 = vrsqrt.f32 %v1293_v41  ;;  %vm1493_vm4 = vcmp.eq.f32.partialorder %v1293_v41, inf  ;;  %v1496_v4 = vand.u32 2147483648, %v1293_v41  ;;  %v3185_v30 = vld [vmem:[#allocation10_spill] sm:$0xff]  ;;  %v3186_v28 = vld [vmem:[#allocation11_spill] sm:$0xff] }
 0x2e6   : > { %2141 = vrcp.f32 %v1555_v36  ;;  %v1556_v34 = vadd.f32 1e-07, %v1476_v31  ;;  %v1296_v38 = vpop.xlane.xlu1 %1295  ;;  %vm1495_vm5 = vcmp.eq.f32.partialorder %v1293_v41, 0.0 }
 0x2e7   : > { %v2132_v53 = vpop.eup %2131  ;;  %2143 = vrsqrt.f32 %v1296_v38  ;;  %vm1500_vm6 = vcmp.eq.f32.partialorder %v1296_v38, inf  ;;  %v1503_v19 = vand.u32 2147483648, %v1296_v38  ;;  %vm1502_vm7 = vcmp.eq.f32.partialorder %v1296_v38, 0.0 }
 0x2e8   : > { %v2134_v46 = vpop.eup %2133  ;;  %2145 = vrcp.f32 %v1556_v34  ;;  %v1478_v52 = vmul.f32 %v2132_v53, %v1287_v14 }
 0x2e9   : > { %v2136_v57 = vpop.eup %2135  ;;  %v1637_v50 = vmul.f32 %v2134_v46, %v2790_v0  ;;  %v1638_v8 = vmul.f32 %v2134_v46, %v2793_v12 }
 0x2ea   : > { %v2138_v2 = vpop.eup %2137  ;;  %v1480_v62 = vsel %vm1479_vm0, %v1287_v14, %v1478_v52  ;;  %v1485_v35 = vmul.f32 %v2136_v57, %v1290_v3 }
 0x2eb   : > { %1701 = vst [vmem:[%s2917_s26 + $0x140] sm:$0xff] %v1637_v50  ;;  %1702 = vst [vmem:[%s2917_s26 + $0x148] sm:$0xff] %v1638_v8  ;;  %v1639_v56 = vmul.f32 %v2138_v2, %v2798_v21  ;;  %v1640_v48 = vmul.f32 %v2138_v2, %v2803_v29  ;;  %v1483_v59 = vsel %vm1481_vm1, %v1482_v58, %v1480_v62  ;;  %v3187_v8 = vld [vmem:[#allocation12_spill] sm:$0xff]  ;;  %v3188_v2 = vld [vmem:[#allocation13_spill] sm:$0xff] }
 0x2ec   : > { %v1557_v0 = vadd.f32 1e-07, %v1483_v59  ;;  %v1487_v17 = vsel %vm1486_vm2, %v1290_v3, %v1485_v35  ;;  %v1299_v12 = vpop.xlane.xlu0 %1298 }
 0x2ed   : > { %1703 = vst [vmem:[%s2917_s26 + $0x150] sm:$0xff] %v1639_v56  ;;  %1704 = vst [vmem:[%s2917_s26 + $0x158] sm:$0xff] %v1640_v48  ;;  %v1490_v49 = vsel %vm1488_vm3, %v1489_v47, %v1487_v17  ;;  %2147 = vrsqrt.f32 %v1299_v12  ;;  %vm1507_vm8 = vcmp.eq.f32.partialorder %v1299_v12, inf  ;;  %v1510_v33 = vand.u32 2147483648, %v1299_v12  ;;  %v3189_v47 = vld [vmem:[#allocation14_spill] sm:$0xff]  ;;  %v3190_v17 = vld [vmem:[#allocation15_spill] sm:$0xff] }
 0x2ee   : > { %2149 = vrcp.f32 %v1557_v0  ;;  %v1558_v23 = vadd.f32 1e-07, %v1490_v49  ;;  %v1302_v37 = vpop.xlane.xlu1 %1301  ;;  %vm1509_vm9 = vcmp.eq.f32.partialorder %v1299_v12, 0.0 }
 0x2ef   : > { %v2140_v39 = vpop.eup %2139  ;;  %2151 = vrsqrt.f32 %v1302_v37  ;;  %vm1514_vm10 = vcmp.eq.f32.partialorder %v1302_v37, inf  ;;  %vm1516_vm11 = vcmp.eq.f32.partialorder %v1302_v37, 0.0 }
 0x2f0   : > { %v2142_v21 = vpop.eup %2141  ;;  %2153 = vrcp.f32 %v1558_v23  ;;  %v1492_v29 = vmul.f32 %v2140_v39, %v1293_v41 }
 0x2f1   : > { %v2144_v1 = vpop.eup %2143  ;;  %v1641_v54 = vmul.f32 %v2142_v21, %v2810_v44  ;;  %v1642_v13 = vmul.f32 %v2142_v21, %v3180_v60 }
 0x2f2   : > { %v2146_v5 = vpop.eup %2145  ;;  %v1494_v16 = vsel %vm1493_vm4, %v1293_v41, %v1492_v29  ;;  %v1499_v11 = vmul.f32 %v2144_v1, %v1296_v38  ;;  %v1517_v41 = vand.u32 2147483648, %v1302_v37 }
 0x2f3   : > { %1705 = vst [vmem:[%s2917_s26 + $0x160] sm:$0xff] %v1641_v54  ;;  %1706 = vst [vmem:[%s2917_s26 + $0x168] sm:$0xff] %v1642_v13  ;;  %v1643_v43 = vmul.f32 %v2146_v5, %v3181_v10  ;;  %v1644_v42 = vmul.f32 %v2146_v5, %v3182_v26  ;;  %v1497_v15 = vsel %vm1495_vm5, %v1496_v4, %v1494_v16  ;;  %v3191_v54 = vld [vmem:[#allocation16_spill] sm:$0xff]  ;;  %v3192_v13 = vld [vmem:[#allocation17_spill] sm:$0xff] }
 0x2f4   : > { %v1559_v44 = vadd.f32 1e-07, %v1497_v15  ;;  %v1501_v9 = vsel %vm1500_vm6, %v1296_v38, %v1499_v11  ;;  %v1305_v45 = vpop.xlane.xlu0 %1304  ;;  %v3193_v16 = vld [vmem:[#allocation18_spill] sm:$0xff]  ;;  %v3194_v10 = vld [vmem:[#allocation19_spill] sm:$0xff] }
 0x2f5   : > { %1707 = vst [vmem:[%s2917_s26 + $0x170] sm:$0xff] %v1643_v43  ;;  %1708 = vst [vmem:[%s2917_s26 + $0x178] sm:$0xff] %v1644_v42  ;;  %v1504_v14 = vsel %vm1502_vm7, %v1503_v19, %v1501_v9  ;;  %2155 = vrsqrt.f32 %v1305_v45  ;;  %vm1521_vm12 = vcmp.eq.f32.partialorder %v1305_v45, inf  ;;  %v1524_v35 = vand.u32 2147483648, %v1305_v45  ;;  %v3195_v42 = vld [vmem:[#allocation20_spill] sm:$0xff]  ;;  %v3196_v19 = vld [vmem:[#allocation21_spill] sm:$0xff] }
 0x2f6   : > { %2157 = vrcp.f32 %v1559_v44  ;;  %v1560_v61 = vadd.f32 1e-07, %v1504_v14  ;;  %v1308_v40 = vpop.xlane.xlu1 %1307  ;;  %vm1523_vm13 = vcmp.eq.f32.partialorder %v1305_v45, 0.0 }
 0x2f7   : > { %v2148_v3 = vpop.eup %2147  ;;  %2159 = vrsqrt.f32 %v1308_v40  ;;  %vm1528_vm14 = vcmp.eq.f32.partialorder %v1308_v40, inf  ;;  %v1531_v23 = vand.u32 2147483648, %v1308_v40  ;;  %vm1530_vm15 = vcmp.eq.f32.partialorder %v1308_v40, 0.0 }
 0x2f8   : > { %v2150_v22 = vpop.eup %2149  ;;  %2161 = vrcp.f32 %v1560_v61  ;;  %v1506_v20 = vmul.f32 %v2148_v3, %v1299_v12  ;;  %v3198_v61 = vld [vmem:[#allocation23_spill] sm:$0xff] }
 0x2f9   : > { %v2152_v25 = vpop.eup %2151  ;;  %v1645_v24 = vmul.f32 %v2150_v22, %v3183_v18  ;;  %v1646_v55 = vmul.f32 %v2150_v22, %v3184_v32 }
 0x2fa   : > { %v2154_v6 = vpop.eup %2153  ;;  %v1508_v27 = vsel %vm1507_vm8, %v1299_v12, %v1506_v20  ;;  %v1513_v63 = vmul.f32 %v2152_v25, %v1302_v37 }
 0x2fb   : > { %1709 = vst [vmem:[%s2917_s26 + $0x180] sm:$0xff] %v1645_v24  ;;  %1710 = vst [vmem:[%s2917_s26 + $0x188] sm:$0xff] %v1646_v55  ;;  %v1647_v7 = vmul.f32 %v2154_v6, %v3185_v30  ;;  %v1648_v36 = vmul.f32 %v2154_v6, %v3186_v28  ;;  %v1511_v51 = vsel %vm1509_vm9, %v1510_v33, %v1508_v27 }
 0x2fc   : > { %v1561_v31 = vadd.f32 1e-07, %v1511_v51  ;;  %v1515_v34 = vsel %vm1514_vm10, %v1302_v37, %v1513_v63 }
 0x2fd   : > { %1711 = vst [vmem:[%s2917_s26 + $0x190] sm:$0xff] %v1647_v7  ;;  %1712 = vst [vmem:[%s2917_s26 + $0x198] sm:$0xff] %v1648_v36  ;;  %v1518_v38 = vsel %vm1516_vm11, %v1517_v41, %v1515_v34 }
 0x2fe   : > { %2163 = vrcp.f32 %v1561_v31  ;;  %v1562_v53 = vadd.f32 1e-07, %v1518_v38 }
 0x2ff   : > { %v2156_v46 = vpop.eup %2155 }
 0x300   : > { %v2158_v52 = vpop.eup %2157  ;;  %2165 = vrcp.f32 %v1562_v53  ;;  %v1520_v57 = vmul.f32 %v2156_v46, %v1305_v45 }
 0x301   : > { %v2160_v50 = vpop.eup %2159  ;;  %v1649_v58 = vmul.f32 %v2158_v52, %v3187_v8  ;;  %v1650_v62 = vmul.f32 %v2158_v52, %v3188_v2 }
 0x302   : > { %v2162_v56 = vpop.eup %2161  ;;  %v1522_v48 = vsel %vm1521_vm12, %v1305_v45, %v1520_v57  ;;  %v1527_v59 = vmul.f32 %v2160_v50, %v1308_v40  ;;  %v3197_v45 = vld [vmem:[#allocation22_spill] sm:$0xff] }
 0x303   : > { %1713 = vst [vmem:[%s2917_s26 + $0x1a0] sm:$0xff] %v1649_v58  ;;  %1714 = vst [vmem:[%s2917_s26 + $0x1a8] sm:$0xff] %v1650_v62  ;;  %v1651_v0 = vmul.f32 %v2162_v56, %v3189_v47  ;;  %v1652_v12 = vmul.f32 %v2162_v56, %v3190_v17  ;;  %v1525_v49 = vsel %vm1523_vm13, %v1524_v35, %v1522_v48 }
 0x304   : > { %v1563_v37 = vadd.f32 1e-07, %v1525_v49  ;;  %v1529_v39 = vsel %vm1528_vm14, %v1308_v40, %v1527_v59 }
 0x305   : > { %1715 = vst [vmem:[%s2917_s26 + $0x1b0] sm:$0xff] %v1651_v0  ;;  %1716 = vst [vmem:[%s2917_s26 + $0x1b8] sm:$0xff] %v1652_v12  ;;  %v1532_v21 = vsel %vm1530_vm15, %v1531_v23, %v1529_v39 }
 0x306   : > { %2167 = vrcp.f32 %v1563_v37  ;;  %v1564_v29 = vadd.f32 1e-07, %v1532_v21 }
 0x308   : > { %v2164_v1 = vpop.eup %2163  ;;  %2169 = vrcp.f32 %v1564_v29 }
 0x309   : > { %v1653_v60 = vmul.f32 %v2164_v1, %v3191_v54  ;;  %v1654_v4 = vmul.f32 %v2164_v1, %v3192_v13 }
 0x30a   : > { %v2166_v5 = vpop.eup %2165 }
 0x30b   : > { %1717 = vst [vmem:[%s2917_s26 + $0x1c0] sm:$0xff] %v1653_v60  ;;  %1718 = vst [vmem:[%s2917_s26 + $0x1c8] sm:$0xff] %v1654_v4  ;;  %v1655_v11 = vmul.f32 %v2166_v5, %v3193_v16  ;;  %v1656_v43 = vmul.f32 %v2166_v5, %v3194_v10 }
 0x30d   : > { %1719 = vst [vmem:[%s2917_s26 + $0x1d0] sm:$0xff] %v1655_v11  ;;  %1720 = vst [vmem:[%s2917_s26 + $0x1d8] sm:$0xff] %v1656_v43 }
 0x310   : > { %v2168_v26 = vpop.eup %2167 }
 0x311   : > { %v1657_v15 = vmul.f32 %v2168_v26, %v3195_v42  ;;  %v1658_v44 = vmul.f32 %v2168_v26, %v3196_v19 }
 0x312   : > { %v2170_v9 = vpop.eup %2169 }
 0x313   : > { %1721 = vst [vmem:[%s2917_s26 + $0x1e0] sm:$0xff] %v1657_v15  ;;  %1722 = vst [vmem:[%s2917_s26 + $0x1e8] sm:$0xff] %v1658_v44  ;;  %v1659_v14 = vmul.f32 %v2170_v9, %v3197_v45  ;;  %v1660_v40 = vmul.f32 %v2170_v9, %v3198_v61 }
 0x315   : > { %1723 = vst [vmem:[%s2917_s26 + $0x1f0] sm:$0xff] %v1659_v14  ;;  %1724 = vst [vmem:[%s2917_s26 + $0x1f8] sm:$0xff] %v1660_v40 }
 0x316   : > { %2184 = shalt.err (!%p2181_p3)
}
 0x317   : > { %s2185_s15 = scalar_lea.hbm %s3081_s7, 8192  ;;  %s2189_s17 = scalar_lea.hbm %s3139_s5, 16384 }
 0x318   : > { %p2186_p4 = scmp.ne.s32.totalorder %s3081_s7, %s2185_s15  ;;  %p2190_p9 = scmp.lt.u32.totalorder %s3081_s7, %s3139_s5 }
 0x319   : > { %p2191_p10 = scmp.lt.u32.totalorder %s2189_s17, %s2185_s15  ;;  %p2193_p12 = scmp.lt.u32.totalorder %s2185_s15, %s3081_s7 }
 0x31a   : > { %p2187_p7 = pnand %p2186_p4, %p2307_p5 }
 0x31b   : > { %p2192_p11 = por %p2191_p10, %p2190_p9 }
 0x31c   : > { %p2188_p8 = pneg %p2187_p7 }
 0x31d   : > { %p2194_p13 = por %p2193_p12, %p2192_p11 }
 0x31f   : > { %p2195_p0 = pnand %p2194_p13, %p2188_p8 }
 0x321   : > { %2198 = shalt.err (!%p2195_p0)
}
 0x322   : > { %s2237_s26 = smov 256   ;;  %s2238_s30 = smov 16  }
 0x323   : > { %1913 = dma.vmem_to_hbm [thread:$0]  (%p2307_p5), %s3083_s6, 8192, %s3081_s7, %s3093_s22, %s2237_s26, %s2237_s26, %s2238_s30  }
 0x324 PF: > { %p1919_p1 = scmp.ge.s32.totalorder %s2233_s21, 2  ;;  %s1755_s9 = sand.u32 1, %s2221_s18  }
 0x325   : > { %s1756_s10 = scalar_lea.sflag [#allocation3], %s1755_s9 }
 0x326   : > { %p1916_p2 = pnand %p1919_p1, %p2311_p6 }
 0x328   : > { %2216 = dma.done.wait (!%p1916_p2), %s1756_s10, 8192  }
 0x329   : > { %2218 = vsyncadd (!%p1916_p2), %s1756_s10, 4294959104  ;;  %p15_p3 = scmp.ge.s32.totalorder %s2294_s24, 4   ;;  %s3199_s18 = smov %s2225_s19 }
 0x32a   : > { %s3200_s19 = smov %s2229_s20  ;;  %s3201_s20 = smov %s2305_s27 }
 0x32b   : > { %s3202_s21 = smov %s2294_s24  ;;  %17 = sbr.rel (!%p15_p3) target bundleno = 3 (0x3), region = 75 }
 0x332   :  { %1761 = vsyncpa [#allocation3], 1 }
 0x333   :  { %1763 = vsyncpa [#allocation3 + $0x1], 1 }

</bundles_post_ra>
